<compile_context>
chip_gen: v7x
topology: tpu7x:2x2x1
jax: 0.10.0
libtpu: 0.0.40
codegen_flags: <defaults>
</compile_context>

<pallas_src>
import functools

import jax
import jax.numpy as jnp
from jax.experimental import pallas as pl
from jax.experimental.pallas import tpu as pltpu

# ---- model hyper-parameters (small, consistent with the module) -------------
SEQ_LEN = 8
BATCH = 2
D_MODEL = 32
N_HEADS = 4
D_K = D_MODEL // N_HEADS
D_FF = 64
N_EXPERTS = 4
LN_EPS = 1e-5   # torch.nn.LayerNorm default


# =============================== fused kernel ================================

def _switch_layer_kernel(x_ref, mask_ref,
                         ln1g_ref, ln1b_ref, ln2g_ref, ln2b_ref,
                         wqkv_ref, bqkv_ref, wo_ref, bo_ref,
                         wsw_ref, bsw_ref,
                         w1_ref, b1_ref, w2_ref, b2_ref,
                         out_ref, counts_ref, rps_ref, pmax_ref):
    N, D = x_ref.shape
    E = wsw_ref.shape[1]
    H = N_HEADS
    dk = D // H
    scale = 1.0 / (dk ** 0.5)

    x = x_ref[...].astype(jnp.float32)

    def layer_norm(v, g, b):
        mu = jnp.mean(v, axis=-1, keepdims=True)
        var = jnp.mean((v - mu) ** 2, axis=-1, keepdims=True)
        return (v - mu) * jax.lax.rsqrt(var + LN_EPS) * g + b

    # ---------------- self-attention sub-layer ----------------
    z = layer_norm(x, ln1g_ref[...], ln1b_ref[...])
    qkv = (jnp.dot(z, wqkv_ref[...], preferred_element_type=jnp.float32)
           + bqkv_ref[...])                                    # [N, 3D]
    q = qkv[:, :D] * scale                                     # fold 1/sqrt(d_k) into q
    k = qkv[:, D:2 * D]
    v = qkv[:, 2 * D:]

    mask = mask_ref[...]                                       # [N, N], nonzero = attend
    heads = []
    for h in range(H):                                         # unrolled: back-to-back MXU issue
        qh = q[:, h * dk:(h + 1) * dk]
        kh = k[:, h * dk:(h + 1) * dk]
        vh = v[:, h * dk:(h + 1) * dk]
        s = jax.lax.dot_general(qh, kh, (((1,), (1,)), ((), ())),
                                preferred_element_type=jnp.float32)   # [N, N]
        s = jnp.where(mask > 0.0, s, -1e30)                    # finite negative: NaN-safe
        s = s - jnp.max(s, axis=-1, keepdims=True)
        p = jnp.exp(s)
        p = p * pl.reciprocal(jnp.sum(p, axis=-1, keepdims=True), approx=True)
        heads.append(jnp.dot(p, vh, preferred_element_type=jnp.float32))
    attn = jnp.concatenate(heads, axis=-1)                     # [N, D]
    attn = (jnp.dot(attn, wo_ref[...], preferred_element_type=jnp.float32)
            + bo_ref[...])
    x1 = x + attn                                              # dropout == identity (inference)

    # ---------------- switch feed-forward sub-layer ----------------
    z2 = layer_norm(x1, ln2g_ref[...], ln2b_ref[...])

    # router softmax
    logits = (jnp.dot(z2, wsw_ref[...], preferred_element_type=jnp.float32)
              + bsw_ref[...])                                  # [N, E]
    logits = logits - jnp.max(logits, axis=-1, keepdims=True)
    ex = jnp.exp(logits)
    route_prob = ex * pl.reciprocal(jnp.sum(ex, axis=-1, keepdims=True), approx=True)

    # argmax routing (first max index on ties, like torch.max), gate built in-kernel
    pmax = jnp.max(route_prob, axis=-1, keepdims=True)         # [N, 1]
    e_ids = jax.lax.broadcasted_iota(jnp.int32, (N, E), 1)
    sel = jnp.min(jnp.where(route_prob >= pmax, e_ids, E), axis=-1, keepdims=True)
    one_hot = (e_ids == sel).astype(jnp.float32)               # [N, E]

    # experts: dense compute over all tokens, gated select, f32 accumulator, single store.
    # TODO(synk): at larger N, use scalar-prefetch token grouping instead of dense+gate.
    acc = jnp.zeros((N, D), jnp.float32)
    for e in range(E):                                         # unrolled over experts
        hdn = (jnp.dot(z2, w1_ref[e], preferred_element_type=jnp.float32)
               + b1_ref[e])
        hdn = jnp.maximum(hdn, 0.0)                            # ReLU expert FFN
        y = (jnp.dot(hdn, w2_ref[e], preferred_element_type=jnp.float32)
             + b2_ref[e])
        acc = acc + one_hot[:, e:e + 1] * y
    ff = acc * pmax                                            # is_scale_prob=True
    x2 = x1 + ff                                               # dropout == identity

    out_ref[...] = x2.astype(out_ref.dtype)
    counts_ref[...] = jnp.sum(one_hot, axis=0, keepdims=True)
    rps_ref[...] = jnp.sum(route_prob, axis=0, keepdims=True)
    pmax_ref[...] = pmax


# =============================== wrapper =====================================

def init_params(key):
    ks = jax.random.split(key, 12)
    s = 0.02
    p = {
        # layer norms
        "ln1_g": jnp.ones((D_MODEL,), jnp.float32),
        "ln1_b": jnp.zeros((D_MODEL,), jnp.float32),
        "ln2_g": jnp.ones((D_MODEL,), jnp.float32),
        "ln2_b": jnp.zeros((D_MODEL,), jnp.float32),
        # multi-head attention (Q, K, V, O projections, all with bias)
        "wq": s * jax.random.normal(ks[0], (D_MODEL, D_MODEL), jnp.float32),
        "bq": jnp.zeros((D_MODEL,), jnp.float32),
        "wk": s * jax.random.normal(ks[1], (D_MODEL, D_MODEL), jnp.float32),
        "bk": jnp.zeros((D_MODEL,), jnp.float32),
        "wv": s * jax.random.normal(ks[2], (D_MODEL, D_MODEL), jnp.float32),
        "bv": jnp.zeros((D_MODEL,), jnp.float32),
        "wo": s * jax.random.normal(ks[3], (D_MODEL, D_MODEL), jnp.float32),
        "bo": jnp.zeros((D_MODEL,), jnp.float32),
        # switch router
        "w_sw": s * jax.random.normal(ks[4], (D_MODEL, N_EXPERTS), jnp.float32),
        "b_sw": jnp.zeros((N_EXPERTS,), jnp.float32),
        # experts (FFN: d_model -> d_ff -> d_model, ReLU)
        "w1": s * jax.random.normal(ks[5], (N_EXPERTS, D_MODEL, D_FF), jnp.float32),
        "b1": jnp.zeros((N_EXPERTS, D_FF), jnp.float32),
        "w2": s * jax.random.normal(ks[6], (N_EXPERTS, D_FF, D_MODEL), jnp.float32),
        "b2": jnp.zeros((N_EXPERTS, D_MODEL), jnp.float32),
    }
    return p


@functools.partial(jax.jit, static_argnames=())
def switch_transformer_layer(params, x, mask):
    """x: [seq, batch, d_model], mask: [seq_q, seq_k, batch] (nonzero = attend)."""
    S, B, D = x.shape
    N = S * B
    E, _, F = params["w1"].shape

    x_flat = x.reshape(N, D)

    # Batch-block-diagonal [N, N] token mask (token order i = s*B + b, matching
    # x.view(-1, d_model)); shared across heads -> no H-times repeated HBM array.
    mask_b = jnp.transpose(mask, (2, 0, 1)).astype(jnp.float32)        # [B, Sq, Sk]
    eye_b = jnp.eye(B, dtype=jnp.float32)
    mask_full = jnp.einsum("bqk,bc->qbkc", mask_b, eye_b).reshape(N, N)

    # fuse Q/K/V projections into one [D, 3D] matmul
    wqkv = jnp.concatenate([params["wq"], params["wk"], params["wv"]], axis=1)
    bqkv = jnp.concatenate([params["bq"], params["bk"], params["bv"]], axis=0)

    def full(shape):
        return pl.BlockSpec(shape, lambda *_: (0,) * len(shape))

    out, counts, rps, pmax = pl.pallas_call(
        _switch_layer_kernel,
        out_shape=(jax.ShapeDtypeStruct((N, D), x.dtype),
                   jax.ShapeDtypeStruct((1, E), jnp.float32),
                   jax.ShapeDtypeStruct((1, E), jnp.float32),
                   jax.ShapeDtypeStruct((N, 1), jnp.float32)),
        grid=(1,),
        in_specs=[full((N, D)), full((N, N)),
                  full((1, D)), full((1, D)), full((1, D)), full((1, D)),
                  full((D, 3 * D)), full((1, 3 * D)),
                  full((D, D)), full((1, D)),
                  full((D, E)), full((1, E)),
                  full((E, D, F)), full((E, 1, F)),
                  full((E, F, D)), full((E, 1, D))],
        out_specs=(full((N, D)), full((1, E)), full((1, E)), full((N, 1))),
        compiler_params=pltpu.CompilerParams(
            dimension_semantics=("arbitrary",)),
    )(x_flat, mask_full,
      params["ln1_g"].reshape(1, D), params["ln1_b"].reshape(1, D),
      params["ln2_g"].reshape(1, D), params["ln2_b"].reshape(1, D),
      wqkv, bqkv.reshape(1, 3 * D),
      params["wo"], params["bo"].reshape(1, D),
      params["w_sw"], params["b_sw"].reshape(1, E),
      params["w1"], params["b1"].reshape(E, 1, F),
      params["w2"], params["b2"].reshape(E, 1, D))

    # drop_tokens=False => no capacity dropping, n_dropped = 0
    return (out.reshape(S, B, D),
            counts.reshape(E),
            rps.reshape(E),
            jnp.array(0, jnp.int32),
            pmax.reshape(N))


# ================================ main =======================================

if __name__ == "__main__":
    key = jax.random.PRNGKey(0)
    pkey, xkey = jax.random.split(key)
    params = init_params(pkey)

    x = jax.random.normal(xkey, (SEQ_LEN, BATCH, D_MODEL), jnp.float32)
    # causal mask, shape [seq_q, seq_k, batch], nonzero = allowed
    causal = jnp.tril(jnp.ones((SEQ_LEN, SEQ_LEN), jnp.float32))
    mask = jnp.broadcast_to(causal[:, :, None], (SEQ_LEN, SEQ_LEN, BATCH))

    out, counts, route_prob_sum, n_dropped, route_prob_max = jax.block_until_ready(
        switch_transformer_layer(params, x, mask))

    assert out.shape == (SEQ_LEN, BATCH, D_MODEL)
    assert counts.shape == (N_EXPERTS,)
    assert route_prob_sum.shape == (N_EXPERTS,)
    assert route_prob_max.shape == (SEQ_LEN * BATCH,)
    assert jnp.all(jnp.isfinite(out))
    assert jnp.isclose(jnp.sum(counts), SEQ_LEN * BATCH)
    print("KERNEL_OK")
</pallas_src>

<mosaic_0001>
module attributes {stable_mosaic.version = 11 : i64} {
  func.func @_switch_layer_kernel(%arg0: i32, %arg1: memref<16x32xf32, #tpu.memory_space<vmem>>, %arg2: memref<16x16xf32, #tpu.memory_space<vmem>>, %arg3: memref<1x32xf32, #tpu.memory_space<vmem>>, %arg4: memref<1x32xf32, #tpu.memory_space<vmem>>, %arg5: memref<1x32xf32, #tpu.memory_space<vmem>>, %arg6: memref<1x32xf32, #tpu.memory_space<vmem>>, %arg7: memref<32x96xf32, #tpu.memory_space<vmem>>, %arg8: memref<1x96xf32, #tpu.memory_space<vmem>>, %arg9: memref<32x32xf32, #tpu.memory_space<vmem>>, %arg10: memref<1x32xf32, #tpu.memory_space<vmem>>, %arg11: memref<32x4xf32, #tpu.memory_space<vmem>>, %arg12: memref<1x4xf32, #tpu.memory_space<vmem>>, %arg13: memref<4x32x64xf32, #tpu.memory_space<vmem>>, %arg14: memref<4x1x64xf32, #tpu.memory_space<vmem>>, %arg15: memref<4x64x32xf32, #tpu.memory_space<vmem>>, %arg16: memref<4x1x32xf32, #tpu.memory_space<vmem>>, %arg17: memref<16x32xf32, #tpu.memory_space<vmem>>, %arg18: memref<1x4xf32, #tpu.memory_space<vmem>>, %arg19: memref<1x4xf32, #tpu.memory_space<vmem>>, %arg20: memref<16x1xf32, #tpu.memory_space<vmem>>) attributes {dimension_semantics = [#tpu.dimension_semantics<arbitrary>], iteration_bounds = array<i64: 1>, scalar_prefetch = 0 : i64, scratch_operands = 0 : i64, tpu.core_type = #tpu.core_type<tc>, window_params = [{pipeline_mode = #tpu.pipeline_mode<synchronous>, transform_indices = @transform_0, window_bounds = array<i64: 16, 32>}, {pipeline_mode = #tpu.pipeline_mode<synchronous>, transform_indices = @transform_1, window_bounds = array<i64: 16, 16>}, {pipeline_mode = #tpu.pipeline_mode<synchronous>, transform_indices = @transform_2, window_bounds = array<i64: 1, 32>}, {pipeline_mode = #tpu.pipeline_mode<synchronous>, transform_indices = @transform_3, window_bounds = array<i64: 1, 32>}, {pipeline_mode = #tpu.pipeline_mode<synchronous>, transform_indices = @transform_4, window_bounds = array<i64: 1, 32>}, {pipeline_mode = #tpu.pipeline_mode<synchronous>, transform_indices = @transform_5, window_bounds = array<i64: 1, 32>}, {pipeline_mode = #tpu.pipeline_mode<synchronous>, transform_indices = @transform_6, window_bounds = array<i64: 32, 96>}, {pipeline_mode = #tpu.pipeline_mode<synchronous>, transform_indices = @transform_7, window_bounds = array<i64: 1, 96>}, {pipeline_mode = #tpu.pipeline_mode<synchronous>, transform_indices = @transform_8, window_bounds = array<i64: 32, 32>}, {pipeline_mode = #tpu.pipeline_mode<synchronous>, transform_indices = @transform_9, window_bounds = array<i64: 1, 32>}, {pipeline_mode = #tpu.pipeline_mode<synchronous>, transform_indices = @transform_10, window_bounds = array<i64: 32, 4>}, {pipeline_mode = #tpu.pipeline_mode<synchronous>, transform_indices = @transform_11, window_bounds = array<i64: 1, 4>}, {pipeline_mode = #tpu.pipeline_mode<synchronous>, transform_indices = @transform_12, window_bounds = array<i64: 4, 32, 64>}, {pipeline_mode = #tpu.pipeline_mode<synchronous>, transform_indices = @transform_13, window_bounds = array<i64: 4, 1, 64>}, {pipeline_mode = #tpu.pipeline_mode<synchronous>, transform_indices = @transform_14, window_bounds = array<i64: 4, 64, 32>}, {pipeline_mode = #tpu.pipeline_mode<synchronous>, transform_indices = @transform_15, window_bounds = array<i64: 4, 1, 32>}, {pipeline_mode = #tpu.pipeline_mode<synchronous>, transform_indices = @transform_16, window_bounds = array<i64: 16, 32>}, {pipeline_mode = #tpu.pipeline_mode<synchronous>, transform_indices = @transform_17, window_bounds = array<i64: 1, 4>}, {pipeline_mode = #tpu.pipeline_mode<synchronous>, transform_indices = @transform_18, window_bounds = array<i64: 1, 4>}, {pipeline_mode = #tpu.pipeline_mode<synchronous>, transform_indices = @transform_19, window_bounds = array<i64: 16, 1>}]} {
    %c0 = arith.constant 0 : index
    %c0_0 = arith.constant 0 : index
    %0 = vector.load %arg1[%c0, %c0_0] : memref<16x32xf32, #tpu.memory_space<vmem>>, vector<16x32xf32>
    %c0_1 = arith.constant 0 : index
    %c0_2 = arith.constant 0 : index
    %1 = vector.load %arg3[%c0_1, %c0_2] : memref<1x32xf32, #tpu.memory_space<vmem>>, vector<1x32xf32>
    %c0_3 = arith.constant 0 : index
    %c0_4 = arith.constant 0 : index
    %2 = vector.load %arg4[%c0_3, %c0_4] : memref<1x32xf32, #tpu.memory_space<vmem>>, vector<1x32xf32>
    %cst = arith.constant dense<0.000000e+00> : vector<16xf32>
    %3 = vector.multi_reduction <add>, %0, %cst [1] : vector<16x32xf32> to vector<16xf32>
    %4 = vector.shape_cast %3 : vector<16xf32> to vector<16x1xf32>
    %cst_5 = arith.constant 3.200000e+01 : f32
    %5 = vector.broadcast %cst_5 : f32 to vector<16x1xf32>
    %6 = arith.divf %4, %5 : vector<16x1xf32>
    %7 = vector.broadcast %6 : vector<16x1xf32> to vector<16x32xf32>
    %8 = arith.subf %0, %7 : vector<16x32xf32>
    %9 = arith.mulf %8, %8 : vector<16x32xf32>
    %cst_6 = arith.constant dense<0.000000e+00> : vector<16xf32>
    %10 = vector.multi_reduction <add>, %9, %cst_6 [1] : vector<16x32xf32> to vector<16xf32>
    %11 = vector.shape_cast %10 : vector<16xf32> to vector<16x1xf32>
    %cst_7 = arith.constant 3.200000e+01 : f32
    %12 = vector.broadcast %cst_7 : f32 to vector<16x1xf32>
    %13 = arith.divf %11, %12 : vector<16x1xf32>
    %14 = vector.broadcast %6 : vector<16x1xf32> to vector<16x32xf32>
    %15 = arith.subf %0, %14 : vector<16x32xf32>
    %cst_8 = arith.constant 9.99999974E-6 : f32
    %16 = vector.broadcast %cst_8 : f32 to vector<16x1xf32>
    %17 = arith.addf %13, %16 : vector<16x1xf32>
    %18 = math.rsqrt %17 : vector<16x1xf32>
    %19 = vector.broadcast %18 : vector<16x1xf32> to vector<16x32xf32>
    %20 = arith.mulf %15, %19 : vector<16x32xf32>
    %21 = vector.broadcast %1 : vector<1x32xf32> to vector<16x32xf32>
    %22 = arith.mulf %20, %21 : vector<16x32xf32>
    %23 = vector.broadcast %2 : vector<1x32xf32> to vector<16x32xf32>
    %24 = arith.addf %22, %23 : vector<16x32xf32>
    %c0_9 = arith.constant 0 : index
    %c0_10 = arith.constant 0 : index
    %25 = vector.load %arg7[%c0_9, %c0_10] : memref<32x96xf32, #tpu.memory_space<vmem>>, vector<32x96xf32>
    %cst_11 = arith.constant dense<0.000000e+00> : vector<16x96xf32>
    %26 = tpu.matmul %24, %25, %cst_11 {dimension_numbers = #tpu.dot_dimension_numbers<[1], [0], [0], [1], [0, 0, 1, 1], [], []>} : vector<16x32xf32>, vector<32x96xf32>, vector<16x96xf32> -> vector<16x96xf32>
    %c0_12 = arith.constant 0 : index
    %c0_13 = arith.constant 0 : index
    %27 = vector.load %arg8[%c0_12, %c0_13] : memref<1x96xf32, #tpu.memory_space<vmem>>, vector<1x96xf32>
    %28 = vector.broadcast %27 : vector<1x96xf32> to vector<16x96xf32>
    %29 = arith.addf %26, %28 : vector<16x96xf32>
    %30 = vector.extract_strided_slice %29 {offsets = [0, 0], sizes = [16, 32], strides = [1, 1]} : vector<16x96xf32> to vector<16x32xf32>
    %cst_14 = arith.constant 0.353553385 : f32
    %31 = vector.broadcast %cst_14 : f32 to vector<16x32xf32>
    %32 = arith.mulf %30, %31 : vector<16x32xf32>
    %33 = vector.extract_strided_slice %29 {offsets = [0, 32], sizes = [16, 32], strides = [1, 1]} : vector<16x96xf32> to vector<16x32xf32>
    %34 = vector.extract_strided_slice %29 {offsets = [0, 64], sizes = [16, 32], strides = [1, 1]} : vector<16x96xf32> to vector<16x32xf32>
    %c0_15 = arith.constant 0 : index
    %c0_16 = arith.constant 0 : index
    %35 = vector.load %arg2[%c0_15, %c0_16] : memref<16x16xf32, #tpu.memory_space<vmem>>, vector<16x16xf32>
    %36 = vector.extract_strided_slice %32 {offsets = [0, 0], sizes = [16, 8], strides = [1, 1]} : vector<16x32xf32> to vector<16x8xf32>
    %37 = vector.extract_strided_slice %33 {offsets = [0, 0], sizes = [16, 8], strides = [1, 1]} : vector<16x32xf32> to vector<16x8xf32>
    %38 = vector.extract_strided_slice %34 {offsets = [0, 0], sizes = [16, 8], strides = [1, 1]} : vector<16x32xf32> to vector<16x8xf32>
    %cst_17 = arith.constant dense<0.000000e+00> : vector<16x16xf32>
    %39 = tpu.matmul %36, %37, %cst_17 {dimension_numbers = #tpu.dot_dimension_numbers<[1], [1], [0], [0], [0, 0, 1, 0], [], []>} : vector<16x8xf32>, vector<16x8xf32>, vector<16x16xf32> -> vector<16x16xf32>
    %cst_18 = arith.constant 0.000000e+00 : f32
    %40 = vector.broadcast %cst_18 : f32 to vector<16x16xf32>
    %41 = arith.cmpf ogt, %35, %40 : vector<16x16xf32>
    %cst_19 = arith.constant -1.000000e+30 : f32
    %42 = vector.broadcast %cst_19 : f32 to vector<16x16xf32>
    %43 = arith.select %41, %39, %42 : vector<16x16xi1>, vector<16x16xf32>
    %cst_20 = arith.constant dense<0xFF800000> : vector<16xf32>
    %44 = vector.multi_reduction <maximumf>, %43, %cst_20 [1] : vector<16x16xf32> to vector<16xf32>
    %45 = vector.shape_cast %44 : vector<16xf32> to vector<16x1xf32>
    %46 = vector.broadcast %45 : vector<16x1xf32> to vector<16x16xf32>
    %47 = arith.subf %43, %46 : vector<16x16xf32>
    %48 = math.exp %47 : vector<16x16xf32>
    %cst_21 = arith.constant dense<0.000000e+00> : vector<16xf32>
    %49 = vector.multi_reduction <add>, %48, %cst_21 [1] : vector<16x16xf32> to vector<16xf32>
    %50 = vector.shape_cast %49 : vector<16xf32> to vector<16x1xf32>
    %51 = tpu.reciprocal %50 {approx = true} : vector<16x1xf32> -> vector<16x1xf32>
    %52 = vector.broadcast %51 : vector<16x1xf32> to vector<16x16xf32>
    %53 = arith.mulf %48, %52 : vector<16x16xf32>
    %cst_22 = arith.constant dense<0.000000e+00> : vector<16x8xf32>
    %54 = tpu.matmul %53, %38, %cst_22 {dimension_numbers = #tpu.dot_dimension_numbers<[1], [0], [0], [1], [0, 0, 1, 1], [], []>} : vector<16x16xf32>, vector<16x8xf32>, vector<16x8xf32> -> vector<16x8xf32>
    %55 = vector.extract_strided_slice %32 {offsets = [0, 8], sizes = [16, 8], strides = [1, 1]} : vector<16x32xf32> to vector<16x8xf32>
    %56 = vector.extract_strided_slice %33 {offsets = [0, 8], sizes = [16, 8], strides = [1, 1]} : vector<16x32xf32> to vector<16x8xf32>
    %57 = vector.extract_strided_slice %34 {offsets = [0, 8], sizes = [16, 8], strides = [1, 1]} : vector<16x32xf32> to vector<16x8xf32>
    %cst_23 = arith.constant dense<0.000000e+00> : vector<16x16xf32>
    %58 = tpu.matmul %55, %56, %cst_23 {dimension_numbers = #tpu.dot_dimension_numbers<[1], [1], [0], [0], [0, 0, 1, 0], [], []>} : vector<16x8xf32>, vector<16x8xf32>, vector<16x16xf32> -> vector<16x16xf32>
    %cst_24 = arith.constant 0.000000e+00 : f32
    %59 = vector.broadcast %cst_24 : f32 to vector<16x16xf32>
    %60 = arith.cmpf ogt, %35, %59 : vector<16x16xf32>
    %cst_25 = arith.constant -1.000000e+30 : f32
    %61 = vector.broadcast %cst_25 : f32 to vector<16x16xf32>
    %62 = arith.select %60, %58, %61 : vector<16x16xi1>, vector<16x16xf32>
    %cst_26 = arith.constant dense<0xFF800000> : vector<16xf32>
    %63 = vector.multi_reduction <maximumf>, %62, %cst_26 [1] : vector<16x16xf32> to vector<16xf32>
    %64 = vector.shape_cast %63 : vector<16xf32> to vector<16x1xf32>
    %65 = vector.broadcast %64 : vector<16x1xf32> to vector<16x16xf32>
    %66 = arith.subf %62, %65 : vector<16x16xf32>
    %67 = math.exp %66 : vector<16x16xf32>
    %cst_27 = arith.constant dense<0.000000e+00> : vector<16xf32>
    %68 = vector.multi_reduction <add>, %67, %cst_27 [1] : vector<16x16xf32> to vector<16xf32>
    %69 = vector.shape_cast %68 : vector<16xf32> to vector<16x1xf32>
    %70 = tpu.reciprocal %69 {approx = true} : vector<16x1xf32> -> vector<16x1xf32>
    %71 = vector.broadcast %70 : vector<16x1xf32> to vector<16x16xf32>
    %72 = arith.mulf %67, %71 : vector<16x16xf32>
    %cst_28 = arith.constant dense<0.000000e+00> : vector<16x8xf32>
    %73 = tpu.matmul %72, %57, %cst_28 {dimension_numbers = #tpu.dot_dimension_numbers<[1], [0], [0], [1], [0, 0, 1, 1], [], []>} : vector<16x16xf32>, vector<16x8xf32>, vector<16x8xf32> -> vector<16x8xf32>
    %74 = vector.extract_strided_slice %32 {offsets = [0, 16], sizes = [16, 8], strides = [1, 1]} : vector<16x32xf32> to vector<16x8xf32>
    %75 = vector.extract_strided_slice %33 {offsets = [0, 16], sizes = [16, 8], strides = [1, 1]} : vector<16x32xf32> to vector<16x8xf32>
    %76 = vector.extract_strided_slice %34 {offsets = [0, 16], sizes = [16, 8], strides = [1, 1]} : vector<16x32xf32> to vector<16x8xf32>
    %cst_29 = arith.constant dense<0.000000e+00> : vector<16x16xf32>
    %77 = tpu.matmul %74, %75, %cst_29 {dimension_numbers = #tpu.dot_dimension_numbers<[1], [1], [0], [0], [0, 0, 1, 0], [], []>} : vector<16x8xf32>, vector<16x8xf32>, vector<16x16xf32> -> vector<16x16xf32>
    %cst_30 = arith.constant 0.000000e+00 : f32
    %78 = vector.broadcast %cst_30 : f32 to vector<16x16xf32>
    %79 = arith.cmpf ogt, %35, %78 : vector<16x16xf32>
    %cst_31 = arith.constant -1.000000e+30 : f32
    %80 = vector.broadcast %cst_31 : f32 to vector<16x16xf32>
    %81 = arith.select %79, %77, %80 : vector<16x16xi1>, vector<16x16xf32>
    %cst_32 = arith.constant dense<0xFF800000> : vector<16xf32>
    %82 = vector.multi_reduction <maximumf>, %81, %cst_32 [1] : vector<16x16xf32> to vector<16xf32>
    %83 = vector.shape_cast %82 : vector<16xf32> to vector<16x1xf32>
    %84 = vector.broadcast %83 : vector<16x1xf32> to vector<16x16xf32>
    %85 = arith.subf %81, %84 : vector<16x16xf32>
    %86 = math.exp %85 : vector<16x16xf32>
    %cst_33 = arith.constant dense<0.000000e+00> : vector<16xf32>
    %87 = vector.multi_reduction <add>, %86, %cst_33 [1] : vector<16x16xf32> to vector<16xf32>
    %88 = vector.shape_cast %87 : vector<16xf32> to vector<16x1xf32>
    %89 = tpu.reciprocal %88 {approx = true} : vector<16x1xf32> -> vector<16x1xf32>
    %90 = vector.broadcast %89 : vector<16x1xf32> to vector<16x16xf32>
    %91 = arith.mulf %86, %90 : vector<16x16xf32>
    %cst_34 = arith.constant dense<0.000000e+00> : vector<16x8xf32>
    %92 = tpu.matmul %91, %76, %cst_34 {dimension_numbers = #tpu.dot_dimension_numbers<[1], [0], [0], [1], [0, 0, 1, 1], [], []>} : vector<16x16xf32>, vector<16x8xf32>, vector<16x8xf32> -> vector<16x8xf32>
    %93 = vector.extract_strided_slice %32 {offsets = [0, 24], sizes = [16, 8], strides = [1, 1]} : vector<16x32xf32> to vector<16x8xf32>
    %94 = vector.extract_strided_slice %33 {offsets = [0, 24], sizes = [16, 8], strides = [1, 1]} : vector<16x32xf32> to vector<16x8xf32>
    %95 = vector.extract_strided_slice %34 {offsets = [0, 24], sizes = [16, 8], strides = [1, 1]} : vector<16x32xf32> to vector<16x8xf32>
    %cst_35 = arith.constant dense<0.000000e+00> : vector<16x16xf32>
    %96 = tpu.matmul %93, %94, %cst_35 {dimension_numbers = #tpu.dot_dimension_numbers<[1], [1], [0], [0], [0, 0, 1, 0], [], []>} : vector<16x8xf32>, vector<16x8xf32>, vector<16x16xf32> -> vector<16x16xf32>
    %cst_36 = arith.constant 0.000000e+00 : f32
    %97 = vector.broadcast %cst_36 : f32 to vector<16x16xf32>
    %98 = arith.cmpf ogt, %35, %97 : vector<16x16xf32>
    %cst_37 = arith.constant -1.000000e+30 : f32
    %99 = vector.broadcast %cst_37 : f32 to vector<16x16xf32>
    %100 = arith.select %98, %96, %99 : vector<16x16xi1>, vector<16x16xf32>
    %cst_38 = arith.constant dense<0xFF800000> : vector<16xf32>
    %101 = vector.multi_reduction <maximumf>, %100, %cst_38 [1] : vector<16x16xf32> to vector<16xf32>
    %102 = vector.shape_cast %101 : vector<16xf32> to vector<16x1xf32>
    %103 = vector.broadcast %102 : vector<16x1xf32> to vector<16x16xf32>
    %104 = arith.subf %100, %103 : vector<16x16xf32>
    %105 = math.exp %104 : vector<16x16xf32>
    %cst_39 = arith.constant dense<0.000000e+00> : vector<16xf32>
    %106 = vector.multi_reduction <add>, %105, %cst_39 [1] : vector<16x16xf32> to vector<16xf32>
    %107 = vector.shape_cast %106 : vector<16xf32> to vector<16x1xf32>
    %108 = tpu.reciprocal %107 {approx = true} : vector<16x1xf32> -> vector<16x1xf32>
    %109 = vector.broadcast %108 : vector<16x1xf32> to vector<16x16xf32>
    %110 = arith.mulf %105, %109 : vector<16x16xf32>
    %cst_40 = arith.constant dense<0.000000e+00> : vector<16x8xf32>
    %111 = tpu.matmul %110, %95, %cst_40 {dimension_numbers = #tpu.dot_dimension_numbers<[1], [0], [0], [1], [0, 0, 1, 1], [], []>} : vector<16x16xf32>, vector<16x8xf32>, vector<16x8xf32> -> vector<16x8xf32>
    %112 = tpu.concatenate %54, %73, %92, %111 in 1 : vector<16x8xf32>, vector<16x8xf32>, vector<16x8xf32>, vector<16x8xf32> -> vector<16x32xf32>
    %c0_41 = arith.constant 0 : index
    %c0_42 = arith.constant 0 : index
    %113 = vector.load %arg9[%c0_41, %c0_42] : memref<32x32xf32, #tpu.memory_space<vmem>>, vector<32x32xf32>
    %cst_43 = arith.constant dense<0.000000e+00> : vector<16x32xf32>
    %114 = tpu.matmul %112, %113, %cst_43 {dimension_numbers = #tpu.dot_dimension_numbers<[1], [0], [0], [1], [0, 0, 1, 1], [], []>} : vector<16x32xf32>, vector<32x32xf32>, vector<16x32xf32> -> vector<16x32xf32>
    %c0_44 = arith.constant 0 : index
    %c0_45 = arith.constant 0 : index
    %115 = vector.load %arg10[%c0_44, %c0_45] : memref<1x32xf32, #tpu.memory_space<vmem>>, vector<1x32xf32>
    %116 = vector.broadcast %115 : vector<1x32xf32> to vector<16x32xf32>
    %117 = arith.addf %114, %116 : vector<16x32xf32>
    %118 = arith.addf %0, %117 : vector<16x32xf32>
    %c0_46 = arith.constant 0 : index
    %c0_47 = arith.constant 0 : index
    %119 = vector.load %arg5[%c0_46, %c0_47] : memref<1x32xf32, #tpu.memory_space<vmem>>, vector<1x32xf32>
    %c0_48 = arith.constant 0 : index
    %c0_49 = arith.constant 0 : index
    %120 = vector.load %arg6[%c0_48, %c0_49] : memref<1x32xf32, #tpu.memory_space<vmem>>, vector<1x32xf32>
    %cst_50 = arith.constant dense<0.000000e+00> : vector<16xf32>
    %121 = vector.multi_reduction <add>, %118, %cst_50 [1] : vector<16x32xf32> to vector<16xf32>
    %122 = vector.shape_cast %121 : vector<16xf32> to vector<16x1xf32>
    %cst_51 = arith.constant 3.200000e+01 : f32
    %123 = vector.broadcast %cst_51 : f32 to vector<16x1xf32>
    %124 = arith.divf %122, %123 : vector<16x1xf32>
    %125 = vector.broadcast %124 : vector<16x1xf32> to vector<16x32xf32>
    %126 = arith.subf %118, %125 : vector<16x32xf32>
    %127 = arith.mulf %126, %126 : vector<16x32xf32>
    %cst_52 = arith.constant dense<0.000000e+00> : vector<16xf32>
    %128 = vector.multi_reduction <add>, %127, %cst_52 [1] : vector<16x32xf32> to vector<16xf32>
    %129 = vector.shape_cast %128 : vector<16xf32> to vector<16x1xf32>
    %cst_53 = arith.constant 3.200000e+01 : f32
    %130 = vector.broadcast %cst_53 : f32 to vector<16x1xf32>
    %131 = arith.divf %129, %130 : vector<16x1xf32>
    %132 = vector.broadcast %124 : vector<16x1xf32> to vector<16x32xf32>
    %133 = arith.subf %118, %132 : vector<16x32xf32>
    %cst_54 = arith.constant 9.99999974E-6 : f32
    %134 = vector.broadcast %cst_54 : f32 to vector<16x1xf32>
    %135 = arith.addf %131, %134 : vector<16x1xf32>
    %136 = math.rsqrt %135 : vector<16x1xf32>
    %137 = vector.broadcast %136 : vector<16x1xf32> to vector<16x32xf32>
    %138 = arith.mulf %133, %137 : vector<16x32xf32>
    %139 = vector.broadcast %119 : vector<1x32xf32> to vector<16x32xf32>
    %140 = arith.mulf %138, %139 : vector<16x32xf32>
    %141 = vector.broadcast %120 : vector<1x32xf32> to vector<16x32xf32>
    %142 = arith.addf %140, %141 : vector<16x32xf32>
    %c0_55 = arith.constant 0 : index
    %c0_56 = arith.constant 0 : index
    %143 = vector.load %arg11[%c0_55, %c0_56] : memref<32x4xf32, #tpu.memory_space<vmem>>, vector<32x4xf32>
    %cst_57 = arith.constant dense<0.000000e+00> : vector<16x4xf32>
    %144 = tpu.matmul %142, %143, %cst_57 {dimension_numbers = #tpu.dot_dimension_numbers<[1], [0], [0], [1], [0, 0, 1, 1], [], []>} : vector<16x32xf32>, vector<32x4xf32>, vector<16x4xf32> -> vector<16x4xf32>
    %c0_58 = arith.constant 0 : index
    %c0_59 = arith.constant 0 : index
    %145 = vector.load %arg12[%c0_58, %c0_59] : memref<1x4xf32, #tpu.memory_space<vmem>>, vector<1x4xf32>
    %146 = vector.broadcast %145 : vector<1x4xf32> to vector<16x4xf32>
    %147 = arith.addf %144, %146 : vector<16x4xf32>
    %cst_60 = arith.constant dense<0xFF800000> : vector<16xf32>
    %148 = vector.multi_reduction <maximumf>, %147, %cst_60 [1] : vector<16x4xf32> to vector<16xf32>
    %149 = vector.shape_cast %148 : vector<16xf32> to vector<16x1xf32>
    %150 = vector.broadcast %149 : vector<16x1xf32> to vector<16x4xf32>
    %151 = arith.subf %147, %150 : vector<16x4xf32>
    %152 = math.exp %151 : vector<16x4xf32>
    %cst_61 = arith.constant dense<0.000000e+00> : vector<16xf32>
    %153 = vector.multi_reduction <add>, %152, %cst_61 [1] : vector<16x4xf32> to vector<16xf32>
    %154 = vector.shape_cast %153 : vector<16xf32> to vector<16x1xf32>
    %155 = tpu.reciprocal %154 {approx = true} : vector<16x1xf32> -> vector<16x1xf32>
    %156 = vector.broadcast %155 : vector<16x1xf32> to vector<16x4xf32>
    %157 = arith.mulf %152, %156 : vector<16x4xf32>
    %cst_62 = arith.constant dense<0xFF800000> : vector<16xf32>
    %158 = vector.multi_reduction <maximumf>, %157, %cst_62 [1] : vector<16x4xf32> to vector<16xf32>
    %159 = vector.shape_cast %158 : vector<16xf32> to vector<16x1xf32>
    %160 = tpu.iota {dimensions = array<i32: 1>} : vector<16x4xi32>
    %161 = vector.broadcast %159 : vector<16x1xf32> to vector<16x4xf32>
    %162 = arith.cmpf oge, %157, %161 : vector<16x4xf32>
    %c4_i32 = arith.constant 4 : i32
    %163 = vector.broadcast %c4_i32 : i32 to vector<16x4xi32>
    %164 = arith.select %162, %160, %163 : vector<16x4xi1>, vector<16x4xi32>
    %cst_63 = arith.constant dense<2147483647> : vector<16xi32>
    %165 = vector.multi_reduction <minsi>, %164, %cst_63 [1] : vector<16x4xi32> to vector<16xi32>
    %166 = vector.shape_cast %165 : vector<16xi32> to vector<16x1xi32>
    %167 = vector.broadcast %166 : vector<16x1xi32> to vector<16x4xi32>
    %168 = arith.cmpi eq, %160, %167 : vector<16x4xi32>
    %169 = arith.extui %168 : vector<16x4xi1> to vector<16x4xi32>
    %170 = arith.sitofp %169 : vector<16x4xi32> to vector<16x4xf32>
    %cst_64 = arith.constant 0.000000e+00 : f32
    %171 = vector.broadcast %cst_64 : f32 to vector<16x32xf32>
    %c0_65 = arith.constant 0 : index
    %c0_66 = arith.constant 0 : index
    %c0_67 = arith.constant 0 : index
    %172 = vector.load %arg13[%c0_65, %c0_66, %c0_67] : memref<4x32x64xf32, #tpu.memory_space<vmem>>, vector<1x32x64xf32>
    %173 = vector.shape_cast %172 : vector<1x32x64xf32> to vector<32x64xf32>
    %cst_68 = arith.constant dense<0.000000e+00> : vector<16x64xf32>
    %174 = tpu.matmul %142, %173, %cst_68 {dimension_numbers = #tpu.dot_dimension_numbers<[1], [0], [0], [1], [0, 0, 1, 1], [], []>} : vector<16x32xf32>, vector<32x64xf32>, vector<16x64xf32> -> vector<16x64xf32>
    %c0_69 = arith.constant 0 : index
    %c0_70 = arith.constant 0 : index
    %c0_71 = arith.constant 0 : index
    %175 = vector.load %arg14[%c0_69, %c0_70, %c0_71] : memref<4x1x64xf32, #tpu.memory_space<vmem>>, vector<1x1x64xf32>
    %176 = vector.shape_cast %175 : vector<1x1x64xf32> to vector<1x64xf32>
    %177 = vector.broadcast %176 : vector<1x64xf32> to vector<16x64xf32>
    %178 = arith.addf %174, %177 : vector<16x64xf32>
    %cst_72 = arith.constant 0.000000e+00 : f32
    %179 = vector.broadcast %cst_72 : f32 to vector<16x64xf32>
    %180 = arith.maximumf %178, %179 : vector<16x64xf32>
    %c0_73 = arith.constant 0 : index
    %c0_74 = arith.constant 0 : index
    %c0_75 = arith.constant 0 : index
    %181 = vector.load %arg15[%c0_73, %c0_74, %c0_75] : memref<4x64x32xf32, #tpu.memory_space<vmem>>, vector<1x64x32xf32>
    %182 = vector.shape_cast %181 : vector<1x64x32xf32> to vector<64x32xf32>
    %cst_76 = arith.constant dense<0.000000e+00> : vector<16x32xf32>
    %183 = tpu.matmul %180, %182, %cst_76 {dimension_numbers = #tpu.dot_dimension_numbers<[1], [0], [0], [1], [0, 0, 1, 1], [], []>} : vector<16x64xf32>, vector<64x32xf32>, vector<16x32xf32> -> vector<16x32xf32>
    %c0_77 = arith.constant 0 : index
    %c0_78 = arith.constant 0 : index
    %c0_79 = arith.constant 0 : index
    %184 = vector.load %arg16[%c0_77, %c0_78, %c0_79] : memref<4x1x32xf32, #tpu.memory_space<vmem>>, vector<1x1x32xf32>
    %185 = vector.shape_cast %184 : vector<1x1x32xf32> to vector<1x32xf32>
    %186 = vector.broadcast %185 : vector<1x32xf32> to vector<16x32xf32>
    %187 = arith.addf %183, %186 : vector<16x32xf32>
    %188 = vector.extract_strided_slice %170 {offsets = [0, 0], sizes = [16, 1], strides = [1, 1]} : vector<16x4xf32> to vector<16x1xf32>
    %189 = vector.broadcast %188 : vector<16x1xf32> to vector<16x32xf32>
    %190 = arith.mulf %189, %187 : vector<16x32xf32>
    %191 = arith.addf %171, %190 : vector<16x32xf32>
    %c1 = arith.constant 1 : index
    %c0_80 = arith.constant 0 : index
    %c0_81 = arith.constant 0 : index
    %192 = vector.load %arg13[%c1, %c0_80, %c0_81] : memref<4x32x64xf32, #tpu.memory_space<vmem>>, vector<1x32x64xf32>
    %193 = vector.shape_cast %192 : vector<1x32x64xf32> to vector<32x64xf32>
    %cst_82 = arith.constant dense<0.000000e+00> : vector<16x64xf32>
    %194 = tpu.matmul %142, %193, %cst_82 {dimension_numbers = #tpu.dot_dimension_numbers<[1], [0], [0], [1], [0, 0, 1, 1], [], []>} : vector<16x32xf32>, vector<32x64xf32>, vector<16x64xf32> -> vector<16x64xf32>
    %c1_83 = arith.constant 1 : index
    %c0_84 = arith.constant 0 : index
    %c0_85 = arith.constant 0 : index
    %195 = vector.load %arg14[%c1_83, %c0_84, %c0_85] : memref<4x1x64xf32, #tpu.memory_space<vmem>>, vector<1x1x64xf32>
    %196 = vector.shape_cast %195 : vector<1x1x64xf32> to vector<1x64xf32>
    %197 = vector.broadcast %196 : vector<1x64xf32> to vector<16x64xf32>
    %198 = arith.addf %194, %197 : vector<16x64xf32>
    %cst_86 = arith.constant 0.000000e+00 : f32
    %199 = vector.broadcast %cst_86 : f32 to vector<16x64xf32>
    %200 = arith.maximumf %198, %199 : vector<16x64xf32>
    %c1_87 = arith.constant 1 : index
    %c0_88 = arith.constant 0 : index
    %c0_89 = arith.constant 0 : index
    %201 = vector.load %arg15[%c1_87, %c0_88, %c0_89] : memref<4x64x32xf32, #tpu.memory_space<vmem>>, vector<1x64x32xf32>
    %202 = vector.shape_cast %201 : vector<1x64x32xf32> to vector<64x32xf32>
    %cst_90 = arith.constant dense<0.000000e+00> : vector<16x32xf32>
    %203 = tpu.matmul %200, %202, %cst_90 {dimension_numbers = #tpu.dot_dimension_numbers<[1], [0], [0], [1], [0, 0, 1, 1], [], []>} : vector<16x64xf32>, vector<64x32xf32>, vector<16x32xf32> -> vector<16x32xf32>
    %c1_91 = arith.constant 1 : index
    %c0_92 = arith.constant 0 : index
    %c0_93 = arith.constant 0 : index
    %204 = vector.load %arg16[%c1_91, %c0_92, %c0_93] : memref<4x1x32xf32, #tpu.memory_space<vmem>>, vector<1x1x32xf32>
    %205 = vector.shape_cast %204 : vector<1x1x32xf32> to vector<1x32xf32>
    %206 = vector.broadcast %205 : vector<1x32xf32> to vector<16x32xf32>
    %207 = arith.addf %203, %206 : vector<16x32xf32>
    %208 = vector.extract_strided_slice %170 {offsets = [0, 1], sizes = [16, 1], strides = [1, 1]} : vector<16x4xf32> to vector<16x1xf32>
    %209 = vector.broadcast %208 : vector<16x1xf32> to vector<16x32xf32>
    %210 = arith.mulf %209, %207 : vector<16x32xf32>
    %211 = arith.addf %191, %210 : vector<16x32xf32>
    %c2 = arith.constant 2 : index
    %c0_94 = arith.constant 0 : index
    %c0_95 = arith.constant 0 : index
    %212 = vector.load %arg13[%c2, %c0_94, %c0_95] : memref<4x32x64xf32, #tpu.memory_space<vmem>>, vector<1x32x64xf32>
    %213 = vector.shape_cast %212 : vector<1x32x64xf32> to vector<32x64xf32>
    %cst_96 = arith.constant dense<0.000000e+00> : vector<16x64xf32>
    %214 = tpu.matmul %142, %213, %cst_96 {dimension_numbers = #tpu.dot_dimension_numbers<[1], [0], [0], [1], [0, 0, 1, 1], [], []>} : vector<16x32xf32>, vector<32x64xf32>, vector<16x64xf32> -> vector<16x64xf32>
    %c2_97 = arith.constant 2 : index
    %c0_98 = arith.constant 0 : index
    %c0_99 = arith.constant 0 : index
    %215 = vector.load %arg14[%c2_97, %c0_98, %c0_99] : memref<4x1x64xf32, #tpu.memory_space<vmem>>, vector<1x1x64xf32>
    %216 = vector.shape_cast %215 : vector<1x1x64xf32> to vector<1x64xf32>
    %217 = vector.broadcast %216 : vector<1x64xf32> to vector<16x64xf32>
    %218 = arith.addf %214, %217 : vector<16x64xf32>
    %cst_100 = arith.constant 0.000000e+00 : f32
    %219 = vector.broadcast %cst_100 : f32 to vector<16x64xf32>
    %220 = arith.maximumf %218, %219 : vector<16x64xf32>
    %c2_101 = arith.constant 2 : index
    %c0_102 = arith.constant 0 : index
    %c0_103 = arith.constant 0 : index
    %221 = vector.load %arg15[%c2_101, %c0_102, %c0_103] : memref<4x64x32xf32, #tpu.memory_space<vmem>>, vector<1x64x32xf32>
    %222 = vector.shape_cast %221 : vector<1x64x32xf32> to vector<64x32xf32>
    %cst_104 = arith.constant dense<0.000000e+00> : vector<16x32xf32>
    %223 = tpu.matmul %220, %222, %cst_104 {dimension_numbers = #tpu.dot_dimension_numbers<[1], [0], [0], [1], [0, 0, 1, 1], [], []>} : vector<16x64xf32>, vector<64x32xf32>, vector<16x32xf32> -> vector<16x32xf32>
    %c2_105 = arith.constant 2 : index
    %c0_106 = arith.constant 0 : index
    %c0_107 = arith.constant 0 : index
    %224 = vector.load %arg16[%c2_105, %c0_106, %c0_107] : memref<4x1x32xf32, #tpu.memory_space<vmem>>, vector<1x1x32xf32>
    %225 = vector.shape_cast %224 : vector<1x1x32xf32> to vector<1x32xf32>
    %226 = vector.broadcast %225 : vector<1x32xf32> to vector<16x32xf32>
    %227 = arith.addf %223, %226 : vector<16x32xf32>
    %228 = vector.extract_strided_slice %170 {offsets = [0, 2], sizes = [16, 1], strides = [1, 1]} : vector<16x4xf32> to vector<16x1xf32>
    %229 = vector.broadcast %228 : vector<16x1xf32> to vector<16x32xf32>
    %230 = arith.mulf %229, %227 : vector<16x32xf32>
    %231 = arith.addf %211, %230 : vector<16x32xf32>
    %c3 = arith.constant 3 : index
    %c0_108 = arith.constant 0 : index
    %c0_109 = arith.constant 0 : index
    %232 = vector.load %arg13[%c3, %c0_108, %c0_109] : memref<4x32x64xf32, #tpu.memory_space<vmem>>, vector<1x32x64xf32>
    %233 = vector.shape_cast %232 : vector<1x32x64xf32> to vector<32x64xf32>
    %cst_110 = arith.constant dense<0.000000e+00> : vector<16x64xf32>
    %234 = tpu.matmul %142, %233, %cst_110 {dimension_numbers = #tpu.dot_dimension_numbers<[1], [0], [0], [1], [0, 0, 1, 1], [], []>} : vector<16x32xf32>, vector<32x64xf32>, vector<16x64xf32> -> vector<16x64xf32>
    %c3_111 = arith.constant 3 : index
    %c0_112 = arith.constant 0 : index
    %c0_113 = arith.constant 0 : index
    %235 = vector.load %arg14[%c3_111, %c0_112, %c0_113] : memref<4x1x64xf32, #tpu.memory_space<vmem>>, vector<1x1x64xf32>
    %236 = vector.shape_cast %235 : vector<1x1x64xf32> to vector<1x64xf32>
    %237 = vector.broadcast %236 : vector<1x64xf32> to vector<16x64xf32>
    %238 = arith.addf %234, %237 : vector<16x64xf32>
    %cst_114 = arith.constant 0.000000e+00 : f32
    %239 = vector.broadcast %cst_114 : f32 to vector<16x64xf32>
    %240 = arith.maximumf %238, %239 : vector<16x64xf32>
    %c3_115 = arith.constant 3 : index
    %c0_116 = arith.constant 0 : index
    %c0_117 = arith.constant 0 : index
    %241 = vector.load %arg15[%c3_115, %c0_116, %c0_117] : memref<4x64x32xf32, #tpu.memory_space<vmem>>, vector<1x64x32xf32>
    %242 = vector.shape_cast %241 : vector<1x64x32xf32> to vector<64x32xf32>
    %cst_118 = arith.constant dense<0.000000e+00> : vector<16x32xf32>
    %243 = tpu.matmul %240, %242, %cst_118 {dimension_numbers = #tpu.dot_dimension_numbers<[1], [0], [0], [1], [0, 0, 1, 1], [], []>} : vector<16x64xf32>, vector<64x32xf32>, vector<16x32xf32> -> vector<16x32xf32>
    %c3_119 = arith.constant 3 : index
    %c0_120 = arith.constant 0 : index
    %c0_121 = arith.constant 0 : index
    %244 = vector.load %arg16[%c3_119, %c0_120, %c0_121] : memref<4x1x32xf32, #tpu.memory_space<vmem>>, vector<1x1x32xf32>
    %245 = vector.shape_cast %244 : vector<1x1x32xf32> to vector<1x32xf32>
    %246 = vector.broadcast %245 : vector<1x32xf32> to vector<16x32xf32>
    %247 = arith.addf %243, %246 : vector<16x32xf32>
    %248 = vector.extract_strided_slice %170 {offsets = [0, 3], sizes = [16, 1], strides = [1, 1]} : vector<16x4xf32> to vector<16x1xf32>
    %249 = vector.broadcast %248 : vector<16x1xf32> to vector<16x32xf32>
    %250 = arith.mulf %249, %247 : vector<16x32xf32>
    %251 = arith.addf %231, %250 : vector<16x32xf32>
    %252 = vector.broadcast %159 : vector<16x1xf32> to vector<16x32xf32>
    %253 = arith.mulf %251, %252 : vector<16x32xf32>
    %254 = arith.addf %118, %253 : vector<16x32xf32>
    %c0_122 = arith.constant 0 : index
    %c0_123 = arith.constant 0 : index
    %255 = vector.load %arg17[%c0_122, %c0_123] : memref<16x32xf32, #tpu.memory_space<vmem>>, vector<16x32xf32>
    tpu.vector_store %arg17[%c0_122, %c0_123], %254 {strides = array<i32>} : memref<16x32xf32, #tpu.memory_space<vmem>>, vector<16x32xf32>,
    %cst_124 = arith.constant dense<0.000000e+00> : vector<4xf32>
    %256 = vector.multi_reduction <add>, %170, %cst_124 [0] : vector<16x4xf32> to vector<4xf32>
    %257 = vector.shape_cast %256 : vector<4xf32> to vector<1x4xf32>
    %c0_125 = arith.constant 0 : index
    %c0_126 = arith.constant 0 : index
    %258 = vector.load %arg18[%c0_125, %c0_126] : memref<1x4xf32, #tpu.memory_space<vmem>>, vector<1x4xf32>
    tpu.vector_store %arg18[%c0_125, %c0_126], %257 {strides = array<i32>} : memref<1x4xf32, #tpu.memory_space<vmem>>, vector<1x4xf32>,
    %cst_127 = arith.constant dense<0.000000e+00> : vector<4xf32>
    %259 = vector.multi_reduction <add>, %157, %cst_127 [0] : vector<16x4xf32> to vector<4xf32>
    %260 = vector.shape_cast %259 : vector<4xf32> to vector<1x4xf32>
    %c0_128 = arith.constant 0 : index
    %c0_129 = arith.constant 0 : index
    %261 = vector.load %arg19[%c0_128, %c0_129] : memref<1x4xf32, #tpu.memory_space<vmem>>, vector<1x4xf32>
    tpu.vector_store %arg19[%c0_128, %c0_129], %260 {strides = array<i32>} : memref<1x4xf32, #tpu.memory_space<vmem>>, vector<1x4xf32>,
    %c0_130 = arith.constant 0 : index
    %c0_131 = arith.constant 0 : index
    %262 = vector.load %arg20[%c0_130, %c0_131] : memref<16x1xf32, #tpu.memory_space<vmem>>, vector<16x1xf32>
    tpu.vector_store %arg20[%c0_130, %c0_131], %159 {strides = array<i32>} : memref<16x1xf32, #tpu.memory_space<vmem>>, vector<16x1xf32>,
    return
  }
  func.func @transform_0(%arg0: i32) -> (i32, i32) {
    %c0_i32 = arith.constant 0 : i32
    %c0_i32_0 = arith.constant 0 : i32
    %c0_i32_1 = arith.constant 0 : i32
    return %c0_i32, %c0_i32_0 : i32, i32
  }
  func.func @transform_1(%arg0: i32) -> (i32, i32) {
    %c0_i32 = arith.constant 0 : i32
    %c0_i32_0 = arith.constant 0 : i32
    %c0_i32_1 = arith.constant 0 : i32
    return %c0_i32, %c0_i32_0 : i32, i32
  }
  func.func @transform_2(%arg0: i32) -> (i32, i32) {
    %c0_i32 = arith.constant 0 : i32
    %c0_i32_0 = arith.constant 0 : i32
    %c0_i32_1 = arith.constant 0 : i32
    return %c0_i32, %c0_i32_0 : i32, i32
  }
  func.func @transform_3(%arg0: i32) -> (i32, i32) {
    %c0_i32 = arith.constant 0 : i32
    %c0_i32_0 = arith.constant 0 : i32
    %c0_i32_1 = arith.constant 0 : i32
    return %c0_i32, %c0_i32_0 : i32, i32
  }
  func.func @transform_4(%arg0: i32) -> (i32, i32) {
    %c0_i32 = arith.constant 0 : i32
    %c0_i32_0 = arith.constant 0 : i32
    %c0_i32_1 = arith.constant 0 : i32
    return %c0_i32, %c0_i32_0 : i32, i32
  }
  func.func @transform_5(%arg0: i32) -> (i32, i32) {
    %c0_i32 = arith.constant 0 : i32
    %c0_i32_0 = arith.constant 0 : i32
    %c0_i32_1 = arith.constant 0 : i32
    return %c0_i32, %c0_i32_0 : i32, i32
  }
  func.func @transform_6(%arg0: i32) -> (i32, i32) {
    %c0_i32 = arith.constant 0 : i32
    %c0_i32_0 = arith.constant 0 : i32
    %c0_i32_1 = arith.constant 0 : i32
    return %c0_i32, %c0_i32_0 : i32, i32
  }
  func.func @transform_7(%arg0: i32) -> (i32, i32) {
    %c0_i32 = arith.constant 0 : i32
    %c0_i32_0 = arith.constant 0 : i32
    %c0_i32_1 = arith.constant 0 : i32
    return %c0_i32, %c0_i32_0 : i32, i32
  }
  func.func @transform_8(%arg0: i32) -> (i32, i32) {
    %c0_i32 = arith.constant 0 : i32
    %c0_i32_0 = arith.constant 0 : i32
    %c0_i32_1 = arith.constant 0 : i32
    return %c0_i32, %c0_i32_0 : i32, i32
  }
  func.func @transform_9(%arg0: i32) -> (i32, i32) {
    %c0_i32 = arith.constant 0 : i32
    %c0_i32_0 = arith.constant 0 : i32
    %c0_i32_1 = arith.constant 0 : i32
    return %c0_i32, %c0_i32_0 : i32, i32
  }
  func.func @transform_10(%arg0: i32) -> (i32, i32) {
    %c0_i32 = arith.constant 0 : i32
    %c0_i32_0 = arith.constant 0 : i32
    %c0_i32_1 = arith.constant 0 : i32
    return %c0_i32, %c0_i32_0 : i32, i32
  }
  func.func @transform_11(%arg0: i32) -> (i32, i32) {
    %c0_i32 = arith.constant 0 : i32
    %c0_i32_0 = arith.constant 0 : i32
    %c0_i32_1 = arith.constant 0 : i32
    return %c0_i32, %c0_i32_0 : i32, i32
  }
  func.func @transform_12(%arg0: i32) -> (i32, i32, i32) {
    %c0_i32 = arith.constant 0 : i32
    %c0_i32_0 = arith.constant 0 : i32
    %c0_i32_1 = arith.constant 0 : i32
    %c0_i32_2 = arith.constant 0 : i32
    return %c0_i32, %c0_i32_0, %c0_i32_1 : i32, i32, i32
  }
  func.func @transform_13(%arg0: i32) -> (i32, i32, i32) {
    %c0_i32 = arith.constant 0 : i32
    %c0_i32_0 = arith.constant 0 : i32
    %c0_i32_1 = arith.constant 0 : i32
    %c0_i32_2 = arith.constant 0 : i32
    return %c0_i32, %c0_i32_0, %c0_i32_1 : i32, i32, i32
  }
  func.func @transform_14(%arg0: i32) -> (i32, i32, i32) {
    %c0_i32 = arith.constant 0 : i32
    %c0_i32_0 = arith.constant 0 : i32
    %c0_i32_1 = arith.constant 0 : i32
    %c0_i32_2 = arith.constant 0 : i32
    return %c0_i32, %c0_i32_0, %c0_i32_1 : i32, i32, i32
  }
  func.func @transform_15(%arg0: i32) -> (i32, i32, i32) {
    %c0_i32 = arith.constant 0 : i32
    %c0_i32_0 = arith.constant 0 : i32
    %c0_i32_1 = arith.constant 0 : i32
    %c0_i32_2 = arith.constant 0 : i32
    return %c0_i32, %c0_i32_0, %c0_i32_1 : i32, i32, i32
  }
  func.func @transform_16(%arg0: i32) -> (i32, i32) {
    %c0_i32 = arith.constant 0 : i32
    %c0_i32_0 = arith.constant 0 : i32
    %c0_i32_1 = arith.constant 0 : i32
    return %c0_i32, %c0_i32_0 : i32, i32
  }
  func.func @transform_17(%arg0: i32) -> (i32, i32) {
    %c0_i32 = arith.constant 0 : i32
    %c0_i32_0 = arith.constant 0 : i32
    %c0_i32_1 = arith.constant 0 : i32
    return %c0_i32, %c0_i32_0 : i32, i32
  }
  func.func @transform_18(%arg0: i32) -> (i32, i32) {
    %c0_i32 = arith.constant 0 : i32
    %c0_i32_0 = arith.constant 0 : i32
    %c0_i32_1 = arith.constant 0 : i32
    return %c0_i32, %c0_i32_0 : i32, i32
  }
  func.func @transform_19(%arg0: i32) -> (i32, i32) {
    %c0_i32 = arith.constant 0 : i32
    %c0_i32_0 = arith.constant 0 : i32
    %c0_i32_1 = arith.constant 0 : i32
    return %c0_i32, %c0_i32_0 : i32, i32
  }
}

</mosaic_0001>

<bundles_post_ra>
// kernel: switch_transformer_layer.1
= control target key start
LH: loop header
LB: loop body
LE: loop exit
PB: predicated region body
PF: predicated region fallthrough
CT: control target
= control target key end

     0   :  { %s3658_s0 = inlined_call_operand.vmem [shape: f32[16,32], index: 0, kind: input, shape index: {}]   ;;  %s3659_s1 = inlined_call_operand.vmem [shape: f32[16,16], index: 1, kind: input, shape index: {}]   ;;  %s3660_s2 = inlined_call_operand.vmem [shape: f32[1,32], index: 2, kind: input, shape index: {}]   ;;  %s3661_s3 = inlined_call_operand.vmem [shape: f32[1,32], index: 3, kind: input, shape index: {}]   ;;  %s3662_s4 = inlined_call_operand.vmem [shape: f32[1,32], index: 4, kind: input, shape index: {}]   ;;  %s3663_s5 = inlined_call_operand.vmem [shape: f32[1,32], index: 5, kind: input, shape index: {}]   ;;  %s3664_s6 = inlined_call_operand.vmem [shape: f32[32,96], index: 6, kind: input, shape index: {}]   ;;  %s3665_s7 = inlined_call_operand.vmem [shape: f32[1,96], index: 7, kind: input, shape index: {}]   ;;  %s3666_s8 = inlined_call_operand.vmem [shape: f32[32,32], index: 8, kind: input, shape index: {}]   ;;  %s3667_s9 = inlined_call_operand.vmem [shape: f32[1,32], index: 9, kind: input, shape index: {}]   ;;  %s3668_s10 = inlined_call_operand.vmem [shape: f32[32,4], index: 10, kind: input, shape index: {}]   ;;  %s3669_s11 = inlined_call_operand.vmem [shape: f32[1,4], index: 11, kind: input, shape index: {}]   ;;  %s3670_s12 = inlined_call_operand.vmem [shape: f32[4,32,64], index: 12, kind: input, shape index: {}]   ;;  %s3671_s13 = inlined_call_operand.vmem [shape: f32[4,1,64], index: 13, kind: input, shape index: {}]   ;;  %s3672_s14 = inlined_call_operand.vmem [shape: f32[4,64,32], index: 14, kind: input, shape index: {}]   ;;  %s3673_s15 = inlined_call_operand.vmem [shape: f32[4,1,32], index: 15, kind: input, shape index: {}]   ;;  %s3674_s16 = inlined_call_operand.hbm [shape: f32[16,32], index: 16, kind: output, shape index: {0}]   ;;  %s3675_s17 = inlined_call_operand.hbm [shape: f32[1,4], index: 17, kind: output, shape index: {1}]   ;;  %s3676_s18 = inlined_call_operand.hbm [shape: f32[1,4], index: 18, kind: output, shape index: {2}]   ;;  %s3677_s19 = inlined_call_operand.vmem [shape: f32[16,1], index: 19, kind: output, shape index: {3}]  }
   0x1   :  { %3680 = sst [smem:[#allocation9_spill]] %s3658_s0 }
   0x2   :  { %3681 = sst [smem:[#allocation10_spill]] %s3659_s1 }
   0x3   :  { %3682 = sst [smem:[#allocation11_spill]] %s3660_s2 }
   0x4   :  { %3683 = sst [smem:[#allocation12_spill]] %s3661_s3 }
   0x5   :  { %25 = vsyncpa [#allocation3], 0  ;;  %s3684_s20 = sld [smem:[#allocation9_spill]]  ;;  %vm63_vm0 = vcmask 261120  }
   0xb   :  { %v3143_v0 = vld [vmem:[%s3684_s20] sm:$0xff]  ;;  %v3148_v1 = vld [vmem:[%s3684_s20 + $0x8] sm:$0xff] }
   0xc   :  { %26 = vsyncpa [#allocation5], 0  ;;  %v64_v2 = vsel %vm63_vm0, %v3143_v0, 0.0  ;;  %v67_v3 = vsel %vm63_vm0, %v3148_v1, 0.0  ;;  %v107_v14 = vld [vmem:[%s3664_s6] sm:$0xff]  ;;  %v108_v15 = vld [vmem:[%s3664_s6 + $0x8] sm:$0xff] }
   0xd   :  { %65 = vadd.xlane.f32.xlu0 %v64_v2  ;;  %v109_v16 = vld [vmem:[%s3664_s6 + $0x10] sm:$0xff]  ;;  %v2651_v17 = vpack.c.bf16 %v108_v15, %v107_v14  ;;  %v110_v18 = vld [vmem:[%s3664_s6 + $0x18] sm:$0xff]  ;;  %s3685_s0 = sld [smem:[#allocation11_spill]]  ;;  %s3686_s20 = sld [smem:[#allocation12_spill]]  ;;  %v2225_v36 = vld [vmem:[%s3665_s7] ss:$0 sm:$0xff] }
   0xe   :  { %v2655_v19 = vpack.c.bf16 %v110_v18, %v109_v16  ;;  %vm209_vm1 = vcmask 64512   ;;  %s3017_s22 = smov 88   ;;  %s3018_s2 = smov 96   ;;  %vm299_vm5 = vcmask 130048   ;;  %vm1043_vm6 = vcmask 195584  }
   0xf   :  { %2652 = vmatprep.subr.bf16.mxu1 %v2651_v17  ;;  %s3019_s23 = smov 120   ;;  %vm3195_vm2 = vmpackc.low %vm209_vm1, %vm209_vm1  ;;  %s3689_s25 = sld [smem:[#allocation10_spill]]  ;;  %vm1276_vm7 = vcmask 31744   ;;  %vm1450_vm8 = vcmask 523264   ;;  %vm2161_vm9 = vcmask 24576   ;;  %vm2173_vm10 = vcmask 7168  }
  0x10   :  { %2654 = vmatpush3.bf16.msra.mxu1 %v2651_v17  ;;  %s3020_s27 = smov 56   ;;  %s3021_s28 = smov 64  }
  0x11   :  { %68 = vadd.xlane.f32.xlu0 %v67_v3  ;;  %2656 = vmatprep.subr.bf16.mxu1 %v2655_v19  ;;  %s3022_s29 = smov 80   ;;  %s3024_s6 = smov 48  }
  0x12   :  { %s3025_s30 = smov 104   ;;  %s3027_s21 = smov 40  }
  0x13   :  { %v2223_v27 = vld [vmem:[%s3685_s0] ss:$0 sm:$0xff]  ;;  %s3023_s0 = smov 112   ;;  %s3028_s1 = smov 8  }
  0x14   :  { %2658 = vmatpush3.bf16.msra.mxu1 %v2655_v19  ;;  %v2224_v29 = vld [vmem:[%s3686_s20] ss:$0 sm:$0xff]  ;;  %s3026_s20 = smov 72  }
  0x15   :  { %v3214_v55 = vld [vmem:[%s3689_s25 + $0x8] sm:$0xff]  ;;  %v3219_v56 = vld [vmem:[%s3689_s25] sm:$0xff] }
  0x16   :  { %vm296_vm3 = vcmp.gt.f32.partialorder %v3214_v55, 0.0  ;;  %vm295_vm4 = vcmp.gt.f32.partialorder %v3219_v56, 0.0 }
  0x9a   :  { %v66_v4 = vpop.xlane.xlu0 %65 }
  0x9b   :  { %v71_v5 = vmul.f32 0.03125, %v66_v4 }
  0x9d   :  { %v73_v6 = vsub.f32 %v3143_v0, %v71_v5 }
  0x9e   :  { %v69_v7 = vpop.xlane.xlu0 %68 }
  0x9f   :  { %v72_v8 = vmul.f32 0.03125, %v69_v7  ;;  %v75_v9 = vmul.f32 %v73_v6, %v73_v6 }
  0xa1   :  { %v74_v10 = vsub.f32 %v3148_v1, %v72_v8  ;;  %v77_v11 = vsel %vm63_vm0, %v75_v9, 0.0 }
  0xa2   :  { %78 = vadd.xlane.f32.xlu1 %v77_v11 }
  0xa3   :  { %v76_v12 = vmul.f32 %v74_v10, %v74_v10 }
  0xa5   :  { %v80_v13 = vsel %vm63_vm0, %v76_v12, 0.0 }
  0xa6   :  { %81 = vadd.xlane.f32.xlu1 %v80_v13 }
 0x12f   :  { %v79_v20 = vpop.xlane.xlu1 %78 }
 0x130   :  { %v83_v21 = vmul.f32 0.03125, %v79_v20 }
 0x132   :  { %v85_v22 = vadd.f32 1e-05, %v83_v21 }
 0x133   :  { %v82_v23 = vpop.xlane.xlu1 %81 }
 0x134   :  { %2899 = vrsqrt.f32 %v85_v22  ;;  %v84_v24 = vmul.f32 0.03125, %v82_v23 }
 0x136   :  { %v86_v25 = vadd.f32 1e-05, %v84_v24 }
 0x138   :  { %2901 = vrsqrt.f32 %v86_v25 }
 0x13e   :  { %v2900_v26 = vpop.eup %2899 }
 0x13f   :  { %v89_v28 = vmul.f32 %v2900_v26, %v73_v6 }
 0x141   :  { %v97_v30 = vmul.f32 %v2223_v27, %v89_v28 }
 0x142   :  { %v2902_v31 = vpop.eup %2901 }
 0x143   :  { %v90_v32 = vmul.f32 %v2902_v31, %v74_v10  ;;  %v105_v33 = vadd.f32 %v2224_v29, %v97_v30 }
 0x145   :  { %v98_v34 = vmul.f32 %v2223_v27, %v90_v32  ;;  %2450 = vmatprep.mubr.msk.f32.mxu1 %vm63_vm0, %v105_v33 }
 0x147   :  { %v106_v35 = vadd.f32 %v2224_v29, %v98_v34 }
 0x149   :  { %2451 = vmatmul.mubr.msk.f32.vlgmr.msra.gmra.mrb[0].mxu1 %vm63_vm0, %v106_v35 }
 0x21c   :  { %v2452_v37 = vpop.f32.mrb[0].mxu1 }
 0x21d   :  { %v196_v38 = vadd.f32 %v2452_v37, %v2225_v36  ;;  %v190_v39 = vpop.f32.mrb[1].mxu1 }
 0x21e   :  { %v191_v40 = vadd.f32 %v2225_v36, %v190_v39 }
 0x21f   :  { %v3190_v43 = vmul.f32 0.35355338, %v196_v38 }
 0x220   :  { %v3181_v41 = vpack.i.bf16 %v196_v38, %v191_v40  ;;  %v3183_v42 = vmul.f32 0.35355338, %v191_v40 }
 0x222   :  { %2840 = vrot.lane.b32.xlu1 %v3181_v41, %s3017_s22  ;;  %2835 = vrot.lane.b32.xlu0 %v3181_v41, %s3018_s2  ;;  %s3029_s22 = smov 16  }
 0x223   :  { %2457 = vmatprep.mubr.msk.f32.mxu1 %vm209_vm1, %v3183_v42 }
 0x226   :  { %409 = vrot.lane.b32.xlu1 %v3183_v42, %s3019_s23 }
 0x22a   :  { %411 = vrot.lane.b32.xlu1 %v3190_v43, %s3019_s23 }
 0x294   :  { %v2841_v44 = vpop.permute.xlu1 %2840  ;;  %v2836_v45 = vpop.permute.xlu0 %2835 }
 0x295   :  { %v2843_v46 = vunpack.i.h.bf16 %v2841_v44  ;;  %v2842_v47 = vunpack.i.l.bf16 %v2841_v44  ;;  %v2838_v48 = vunpack.i.h.bf16 %v2836_v45  ;;  %v2837_v49 = vunpack.i.l.bf16 %v2836_v45 }
 0x297   :  { %v2659_v51 = vpack.c.bf16 %v2838_v48, %v2837_v49  ;;  %v2669_v52 = vpack.c.bf16 %v2843_v46, %v2842_v47 }
 0x298   :  { %v410_v53 = vpop.permute.xlu1 %409 }
 0x299   :  { %2661 = vmatprep.subr.msk.bf16.mxu1 %vm3195_vm2, %v2659_v51 }
 0x29a   :  { %2664 = vmatpush3.bf16.xpose.msk.msra.mxu1 %vm3195_vm2, %v2659_v51 }
 0x29b   :  { %2671 = vmatprep.subr.msk.bf16.mxu1 %vm3195_vm2, %v2669_v52 }
 0x29c   :  { %v412_v54 = vpop.permute.xlu1 %411 }
 0x2a1   :  { %2458 = vmatmul.mubr.msk.f32.vlgmr.msra.gmra.mrb[2].mxu1 %vm209_vm1, %v3190_v43 }
 0x2a2   :  { %2674 = vmatpush3.bf16.xpose.msk.msra.mxu1 %vm3195_vm2, %v2669_v52  ;;  %2471 = vmatprep.mubr.msk.f32.mxu1 %vm209_vm1, %v410_v53 }
 0x2a9   :  { %2472 = vmatmul.mubr.msk.f32.vlgmr.msra.gmra.mrb[4].mxu1 %vm209_vm1, %v412_v54 }
 0x374   :  { %v2459_v57 = vpop.f32.mrb[2].mxu1 }
 0x375   :  { %v298_v58 = vsel %vm296_vm3, %v2459_v57, -1e+30  ;;  %v286_v59 = vpop.f32.mrb[3].mxu1 }
 0x376   :  { %v297_v60 = vsel %vm295_vm4, %v286_v59, -1e+30  ;;  %v303_v61 = vsel %vm299_vm5, %v298_v58, -inf }
 0x377   :  { %304 = vmax.xlane.f32.xlu1 %v303_v61  ;;  %v300_v62 = vsel %vm299_vm5, %v297_v60, -inf }
 0x378   :  { %301 = vmax.xlane.f32.xlu0 %v300_v62 }
 0x37c   :  { %v2473_v63 = vpop.f32.mrb[4].mxu1 }
 0x37d   :  { %v491_v2 = vpop.f32.mrb[5].mxu1  ;;  %v501_v5 = vsel %vm296_vm3, %v2473_v63, -1e+30 }
 0x37e   :  { %v500_v3 = vsel %vm295_vm4, %v491_v2, -1e+30  ;;  %v505_v6 = vsel %vm299_vm5, %v501_v5, -inf }
 0x37f   :  { %v502_v4 = vsel %vm299_vm5, %v500_v3, -inf }
 0x380   :  { %503 = vmax.xlane.f32.xlu0 %v502_v4 }
 0x384   :  { %506 = vmax.xlane.f32.xlu0 %v505_v6 }
 0x404   :  { %v305_v7 = vpop.xlane.xlu1 %304 }
 0x405   :  { %v307_v8 = vsub.f32 %v298_v58, %v305_v7  ;;  %v302_v9 = vpop.xlane.xlu0 %301 }
 0x406   :  { %v306_v10 = vsub.f32 %v297_v60, %v302_v9 }
 0x407   :  { %v310_v11 = vmul.f32 1.442695, %v307_v8 }
 0x408   :  { %v308_v12 = vmul.f32 1.442695, %v306_v10 }
 0x409   :  { %2903 = vpow2.f32 %v310_v11 }
 0x40a   :  { %2905 = vpow2.f32 %v308_v12 }
 0x40d   :  { %v504_v13 = vpop.xlane.xlu0 %503 }
 0x40e   :  { %v508_v14 = vsub.f32 %v500_v3, %v504_v13 }
 0x410   :  { %v510_v15 = vmul.f32 1.442695, %v508_v14 }
 0x411   :  { %v507_v16 = vpop.xlane.xlu0 %506 }
 0x412   :  { %2907 = vpow2.f32 %v510_v15  ;;  %v509_v17 = vsub.f32 %v501_v5, %v507_v16 }
 0x413   :  { %v2904_v18 = vpop.eup %2903 }
 0x414   :  { %v2906_v19 = vpop.eup %2905  ;;  %v512_v20 = vmul.f32 1.442695, %v509_v17  ;;  %v315_v21 = vsel %vm299_vm5, %v2904_v18, 0.0 }
 0x415   :  { %316 = vadd.xlane.f32.xlu1 %v315_v21  ;;  %v312_v22 = vsel %vm299_vm5, %v2906_v19, 0.0 }
 0x416   :  { %2909 = vpow2.f32 %v512_v20  ;;  %313 = vadd.xlane.f32.xlu0 %v312_v22 }
 0x41c   :  { %v2908_v23 = vpop.eup %2907 }
 0x41d   :  { %v514_v24 = vsel %vm299_vm5, %v2908_v23, 0.0 }
 0x41e   :  { %515 = vadd.xlane.f32.xlu0 %v514_v24 }
 0x420   :  { %v2910_v25 = vpop.eup %2909 }
 0x421   :  { %v517_v26 = vsel %vm299_vm5, %v2910_v25, 0.0 }
 0x422   :  { %518 = vadd.xlane.f32.xlu1 %v517_v26 }
 0x433   :  { %2850 = vrot.lane.b32.xlu1 %v3181_v41, %s3020_s27 }
 0x434   :  { %2845 = vrot.lane.b32.xlu0 %v3181_v41, %s3021_s28  ;;  %s3030_s28 = smov 24  }
 0x437   :  { %2855 = vrot.lane.b32.xlu1 %v3181_v41, %s3022_s29 }
 0x438   :  { %613 = vrot.lane.b32.xlu0 %v3190_v43, %s3023_s0 }
 0x43b   :  { %611 = vrot.lane.b32.xlu1 %v3183_v42, %s3023_s0 }
 0x4a2   :  { %v317_v28 = vpop.xlane.xlu1 %316 }
 0x4a3   :  { %v314_v27 = vpop.xlane.xlu0 %313 }
 0x4a4   :  { %2911 = vrcp.f32 %v314_v27 }
 0x4a5   :  { %2913 = vrcp.f32 %v317_v28 }
 0x4ab   :  { %v516_v29 = vpop.xlane.xlu0 %515 }
 0x4ac   :  { %2915 = vrcp.f32 %v516_v29 }
 0x4ae   :  { %v2912_v30 = vpop.eup %2911 }
 0x4af   :  { %v519_v31 = vpop.xlane.xlu1 %518  ;;  %v2846_v32 = vpop.permute.xlu0 %2845  ;;  %v320_v33 = vmul.f32 %v2912_v30, %v2906_v19 }
 0x4b0   :  { %2917 = vrcp.f32 %v519_v31  ;;  %v2848_v34 = vunpack.i.h.bf16 %v2846_v32  ;;  %v2847_v35 = vunpack.i.l.bf16 %v2846_v32  ;;  %v2914_v37 = vpop.eup %2913 }
 0x4b1   :  { %2464 = vmatprep.mubr.msk.f32.mxu0 %vm299_vm5, %v320_v33  ;;  %v321_v46 = vmul.f32 %v2914_v37, %v2904_v18 }
 0x4b2   :  { %v2665_v36 = vpack.c.bf16 %v2848_v34, %v2847_v35 }
 0x4b3   :  { %v2851_v38 = vpop.permute.xlu1 %2850  ;;  %v614_v58 = vpop.permute.xlu0 %613 }
 0x4b4   :  { %v2853_v39 = vunpack.i.h.bf16 %v2851_v38  ;;  %v2852_v40 = vunpack.i.l.bf16 %v2851_v38  ;;  %2666 = vmatprep.subr.bf16.mxu0 %v2665_v36 }
 0x4b5   :  { %2668 = vmatpush3.bf16.msra.mxu0 %v2665_v36 }
 0x4b6   :  { %v2916_v44 = vpop.eup %2915  ;;  %v2675_v45 = vpack.c.bf16 %v2853_v39, %v2852_v40 }
 0x4b7   :  { %v2856_v47 = vpop.permute.xlu1 %2855  ;;  %v522_v48 = vmul.f32 %v2916_v44, %v2908_v23 }
 0x4b8   :  { %v2858_v49 = vunpack.i.h.bf16 %v2856_v47  ;;  %v2857_v51 = vunpack.i.l.bf16 %v2856_v47  ;;  %2465 = vmatmul.mubr.msk.f32.vlgmr.msra.gmra.mrb[0].mxu0 %vm299_vm5, %v321_v46  ;;  %2676 = vmatprep.subr.bf16.mxu0 %v2675_v45 }
 0x4b9   :  { %2678 = vmatpush3.bf16.msra.mxu0 %v2675_v45  ;;  %2478 = vmatprep.mubr.msk.f32.mxu0 %vm299_vm5, %v522_v48 }
 0x4ba   :  { %v2918_v52 = vpop.eup %2917  ;;  %v2679_v53 = vpack.c.bf16 %v2858_v49, %v2857_v51 }
 0x4bb   :  { %v523_v54 = vmul.f32 %v2918_v52, %v2910_v25  ;;  %v612_v57 = vpop.permute.xlu1 %611 }
 0x4bc   :  { %2681 = vmatprep.subr.msk.bf16.mxu0 %vm3195_vm2, %v2679_v53 }
 0x4bd   :  { %2479 = vmatmul.mubr.msk.f32.vlgmr.msra.gmra.mrb[2].mxu0 %vm299_vm5, %v523_v54 }
 0x4be   :  { %2485 = vmatprep.mubr.msk.f32.mxu0 %vm209_vm1, %v612_v57 }
 0x4c2   :  { %2684 = vmatpush3.bf16.xpose.msk.msra.mxu0 %vm3195_vm2, %v2679_v53 }
 0x4c9   :  { %2486 = vmatmul.mubr.msk.f32.vlgmr.msra.gmra.mrb[4].mxu0 %vm209_vm1, %v614_v58 }
 0x58b   :  { %v3254_v59 = vpop.f32.mrb[0].mxu0 }
 0x58c   :  { %v3256_v60 = vpop.f32.mrb[1].mxu0 }
 0x590   :  { %v3258_v61 = vpop.f32.mrb[2].mxu0 }
 0x591   :  { %v3260_v62 = vpop.f32.mrb[3].mxu0 }
 0x59c   :  { %v2487_v63 = vpop.f32.mrb[4].mxu0 }
 0x59d   :  { %v703_v2 = vsel %vm296_vm3, %v2487_v63, -1e+30  ;;  %v693_v3 = vpop.f32.mrb[5].mxu0 }
 0x59e   :  { %v702_v4 = vsel %vm295_vm4, %v693_v3, -1e+30  ;;  %v707_v5 = vsel %vm299_vm5, %v703_v2, -inf  ;;  %v1048_v3 = vld [vmem:[%s3666_s8 + $0x10] sm:$0xff] }
 0x59f   :  { %708 = vmax.xlane.f32.xlu0 %v707_v5  ;;  %v704_v6 = vsel %vm299_vm5, %v702_v4, -inf  ;;  %v1049_v5 = vld [vmem:[%s3666_s8 + $0x18] sm:$0xff] }
 0x5a0   :  { %705 = vmax.xlane.f32.xlu1 %v704_v6  ;;  %v2703_v6 = vpack.c.bf16 %v1049_v5, %v1048_v3  ;;  %v2256_v3 = vld [vmem:[%s3663_s5] ss:$0 sm:$0xff] }
 0x5b1   :  { %2860 = vrot.lane.b32.xlu1 %v3181_v41, %s3024_s6 }
 0x5b5   :  { %813 = vrot.lane.b32.xlu1 %v3183_v42, %s3025_s30 }
 0x5b9   :  { %815 = vrot.lane.b32.xlu1 %v3190_v43, %s3025_s30 }
 0x62c   :  { %v709_v7 = vpop.xlane.xlu0 %708 }
 0x62d   :  { %v711_v8 = vsub.f32 %v703_v2, %v709_v7  ;;  %v706_v9 = vpop.xlane.xlu1 %705  ;;  %v1046_v2 = vld [vmem:[%s3666_s8] sm:$0xff] }
 0x62e   :  { %v710_v10 = vsub.f32 %v702_v4, %v706_v9 }
 0x62f   :  { %v714_v11 = vmul.f32 1.442695, %v711_v8 }
 0x630   :  { %v712_v12 = vmul.f32 1.442695, %v710_v10 }
 0x631   :  { %2919 = vpow2.f32 %v714_v11  ;;  %v2861_v13 = vpop.permute.xlu1 %2860 }
 0x632   :  { %v2863_v14 = vunpack.i.h.bf16 %v2861_v13  ;;  %v2862_v15 = vunpack.i.l.bf16 %v2861_v13  ;;  %2921 = vpow2.f32 %v712_v12 }
 0x634   :  { %v2685_v16 = vpack.c.bf16 %v2863_v14, %v2862_v15 }
 0x635   :  { %v814_v29 = vpop.permute.xlu1 %813 }
 0x636   :  { %2686 = vmatprep.subr.bf16.mxu1 %v2685_v16 }
 0x637   :  { %2688 = vmatpush3.bf16.msra.mxu1 %v2685_v16 }
 0x639   :  { %v816_v30 = vpop.permute.xlu1 %815 }
 0x63b   :  { %v2920_v17 = vpop.eup %2919 }
 0x63c   :  { %v719_v18 = vsel %vm299_vm5, %v2920_v17, 0.0  ;;  %v2922_v42 = vpop.eup %2921 }
 0x63d   :  { %720 = vadd.xlane.f32.xlu0 %v719_v18  ;;  %v716_v43 = vsel %vm299_vm5, %v2922_v42, 0.0 }
 0x641   :  { %717 = vadd.xlane.f32.xlu0 %v716_v43 }
 0x657   :  { %2865 = vrot.lane.b32.xlu0 %v3181_v41, %s3026_s20 }
 0x6ca   :  { %v721_v19 = vpop.xlane.xlu0 %720 }
 0x6cb   :  { %2923 = vrcp.f32 %v721_v19 }
 0x6ce   :  { %v718_v20 = vpop.xlane.xlu0 %717 }
 0x6cf   :  { %2925 = vrcp.f32 %v718_v20 }
 0x6d2   :  { %v2866_v21 = vpop.permute.xlu0 %2865 }
 0x6d3   :  { %v2868_v22 = vunpack.i.h.bf16 %v2866_v21  ;;  %v2867_v23 = vunpack.i.l.bf16 %v2866_v21 }
 0x6d5   :  { %v2689_v24 = vpack.c.bf16 %v2868_v22, %v2867_v23  ;;  %v2924_v25 = vpop.eup %2923 }
 0x6d6   :  { %v725_v28 = vmul.f32 %v2924_v25, %v2920_v17 }
 0x6d7   :  { %2691 = vmatprep.subr.msk.bf16.mxu1 %vm3195_vm2, %v2689_v24 }
 0x6d9   :  { %v2926_v26 = vpop.eup %2925 }
 0x6da   :  { %v724_v27 = vmul.f32 %v2926_v26, %v2922_v42 }
 0x6dc   :  { %2492 = vmatprep.mubr.msk.f32.mxu1 %vm299_vm5, %v724_v27 }
 0x6dd   :  { %2493 = vmatmul.mubr.msk.f32.vlgmr.msra.gmra.mrb[6].mxu1 %vm299_vm5, %v725_v28 }
 0x6de   :  { %2694 = vmatpush3.bf16.xpose.msk.msra.mxu1 %vm3195_vm2, %v2689_v24  ;;  %2499 = vmatprep.mubr.msk.f32.mxu1 %vm209_vm1, %v814_v29 }
 0x6e5   :  { %2500 = vmatmul.mubr.msk.f32.vlgmr.msra.gmra.mrb[8].mxu1 %vm209_vm1, %v816_v30 }
 0x7b0   :  { %v2494_v31 = vpop.f32.mrb[6].mxu1 }
 0x7b1   :  { %v804_v32 = vpop.f32.mrb[7].mxu1 }
 0x7b8   :  { %v2501_v33 = vpop.f32.mrb[8].mxu1 }
 0x7b9   :  { %v905_v34 = vsel %vm296_vm3, %v2501_v33, -1e+30  ;;  %v895_v35 = vpop.f32.mrb[9].mxu1 }
 0x7ba   :  { %v904_v36 = vsel %vm295_vm4, %v895_v35, -1e+30  ;;  %v909_v37 = vsel %vm299_vm5, %v905_v34, -inf  ;;  %v1348_v35 = vld [vmem:[%s3670_s12 + $0x8] sm:$0xff] }
 0x7bb   :  { %910 = vmax.xlane.f32.xlu0 %v909_v37  ;;  %v906_v50 = vsel %vm299_vm5, %v904_v36, -inf  ;;  %v1184_v37 = vld [vmem:[%s3668_s10] sm:$0xff] }
 0x7bc   :  { %907 = vmax.xlane.f32.xlu1 %v906_v50  ;;  %v1185_v50 = vld [vmem:[%s3668_s10 + $0x8] sm:$0xff] }
 0x7cd   :  { %2870 = vrot.lane.b32.xlu1 %v3181_v41, %s3027_s21 }
 0x7d1   :  { %1019 = vrot.lane.b32.xlu1 %v3258_v61, %s3028_s1 }
 0x7d5   :  { %1025 = vrot.lane.b32.xlu1 %v804_v32, %s3029_s22 }
 0x7d9   :  { %1027 = vrot.lane.b32.xlu1 %v2494_v31, %s3029_s22 }
 0x848   :  { %v911_v55 = vpop.xlane.xlu0 %910 }
 0x849   :  { %v913_v38 = vsub.f32 %v905_v34, %v911_v55  ;;  %v908_v56 = vpop.xlane.xlu1 %907  ;;  %v1347_v34 = vld [vmem:[%s3670_s12] sm:$0xff]  ;;  %v2707_v55 = vpack.c.bf16 %v1185_v50, %v1184_v37 }
 0x84a   :  { %v912_v39 = vsub.f32 %v904_v36, %v908_v56  ;;  %v2715_v36 = vpack.c.bf16 %v1348_v35, %v1347_v34  ;;  %v1350_v56 = vld [vmem:[%s3670_s12 + $0x18] sm:$0xff]  ;;  %v2309_v34 = vld [vmem:[%s3670_s12 + $0x68] sm:$0xff]  ;;  %v2262_v37 = vld [vmem:[%s3671_s13] ss:$0 sm:$0xff] }
 0x84b   :  { %v916_v40 = vmul.f32 1.442695, %v913_v38  ;;  %2708 = vmatprep.subr.bf16.mxu1 %v2707_v55  ;;  %v1349_v38 = vld [vmem:[%s3670_s12 + $0x10] sm:$0xff] }
 0x84c   :  { %v914_v44 = vmul.f32 1.442695, %v912_v39  ;;  %2710 = vmatpush3.bf16.msra.mxu1 %v2707_v55  ;;  %v2719_v39 = vpack.c.bf16 %v1350_v56, %v1349_v38 }
 0x84d   :  { %v2871_v45 = vpop.permute.xlu1 %2870 }
 0x84e   :  { %2927 = vpow2.f32 %v914_v44  ;;  %v2873_v46 = vunpack.i.h.bf16 %v2871_v45  ;;  %v2872_v47 = vunpack.i.l.bf16 %v2871_v45  ;;  %v1187_v44 = vld [vmem:[%s3668_s10 + $0x18] sm:$0xff] }
 0x84f   :  { %2929 = vpow2.f32 %v916_v40  ;;  %v1186_v40 = vld [vmem:[%s3668_s10 + $0x10] sm:$0xff] }
 0x850   :  { %v2695_v48 = vpack.c.bf16 %v2873_v46, %v2872_v47  ;;  %v2711_v45 = vpack.c.bf16 %v1187_v44, %v1186_v40  ;;  %v2268_v46 = vld [vmem:[%s3670_s12 + $0x20] sm:$0xff]  ;;  %v2269_v47 = vld [vmem:[%s3670_s12 + $0x28] sm:$0xff] }
 0x851   :  { %v1020_v9 = vpop.permute.xlu1 %1019 }
 0x852   :  { %2696 = vmatprep.subr.bf16.mxu0 %v2695_v48  ;;  %v1040_v15 = vsel %vm209_vm1, %v3254_v59, %v1020_v9  ;;  %2712 = vmatprep.subr.bf16.mxu1 %v2711_v45  ;;  %v2271_v9 = vld [vmem:[%s3670_s12 + $0x38] sm:$0xff] }
 0x853   :  { %2698 = vmatpush3.bf16.msra.mxu0 %v2695_v48  ;;  %v2739_v48 = vpack.c.bf16 %v2269_v47, %v2268_v46  ;;  %2714 = vmatpush3.bf16.msra.mxu1 %v2711_v45  ;;  %v2290_v46 = vld [vmem:[%s3670_s12 + $0x50] sm:$0xff]  ;;  %v2291_v47 = vld [vmem:[%s3670_s12 + $0x58] sm:$0xff] }
 0x855   :  { %v1026_v10 = vpop.permute.xlu1 %1025 }
 0x858   :  { %v2928_v41 = vpop.eup %2927 }
 0x859   :  { %v918_v49 = vsel %vm299_vm5, %v2928_v41, 0.0  ;;  %v2930_v51 = vpop.eup %2929  ;;  %v1028_v12 = vpop.permute.xlu1 %1027 }
 0x85a   :  { %919 = vadd.xlane.f32.xlu0 %v918_v49  ;;  %v921_v52 = vsel %vm299_vm5, %v2930_v51, 0.0  ;;  %v1042_v18 = vsel %vm299_vm5, %v1040_v15, %v1028_v12  ;;  %v1436_v49 = vld [vmem:[%s3672_s14 + $0x8] sm:$0xff]  ;;  %v1438_v12 = vld [vmem:[%s3672_s14 + $0x18] sm:$0xff] }
 0x85e   :  { %922 = vadd.xlane.f32.xlu0 %v921_v52 }
 0x874   :  { %1017 = vrot.lane.b32.xlu0 %v3260_v62, %s3028_s1  ;;  %v1047_v62 = vld [vmem:[%s3666_s8 + $0x8] sm:$0xff] }
 0x875   :  { %v2699_v4 = vpack.c.bf16 %v1047_v62, %v1046_v2  ;;  %v2255_v2 = vld [vmem:[%s3662_s4] ss:$0 sm:$0xff] }
 0x877   :  { %2700 = vmatprep.subr.bf16.mxu0 %v2699_v4 }
 0x8e7   :  { %v920_v53 = vpop.xlane.xlu0 %919 }
 0x8e8   :  { %2931 = vrcp.f32 %v920_v53 }
 0x8eb   :  { %v923_v54 = vpop.xlane.xlu0 %922 }
 0x8ec   :  { %2933 = vrcp.f32 %v923_v54 }
 0x8ef   :  { %v1018_v11 = vpop.permute.xlu0 %1017 }
 0x8f0   :  { %v1039_v13 = vsel %vm209_vm1, %v3256_v60, %v1018_v11  ;;  %v2252_v60 = vld [vmem:[%s3667_s9] ss:$0 sm:$0xff]  ;;  %v1437_v11 = vld [vmem:[%s3672_s14 + $0x10] sm:$0xff] }
 0x8f1   :  { %v1041_v16 = vsel %vm299_vm5, %v1039_v13, %v1026_v10  ;;  %v2727_v15 = vpack.c.bf16 %v1438_v12, %v1437_v11  ;;  %v2316_v11 = vld [vmem:[%s3672_s14 + $0xc0] sm:$0xff]  ;;  %v2317_v12 = vld [vmem:[%s3672_s14 + $0xc8] sm:$0xff] }
 0x8f2   :  { %v2932_v57 = vpop.eup %2931 }
 0x8f3   :  { %v926_v58 = vmul.f32 %v2932_v57, %v2928_v41  ;;  %v1435_v41 = vld [vmem:[%s3672_s14] sm:$0xff] }
 0x8f5   :  { %2506 = vmatprep.mubr.msk.f32.mxu0 %vm299_vm5, %v926_v58 }
 0x8f6   :  { %v2934_v61 = vpop.eup %2933 }
 0x8f7   :  { %v927_v63 = vmul.f32 %v2934_v61, %v2930_v51  ;;  %v2723_v51 = vpack.c.bf16 %v1436_v49, %v1435_v41 }
 0x8f9   :  { %2507 = vmatmul.mubr.msk.f32.vlgmr.msra.gmra.mrb[6].mxu0 %vm299_vm5, %v927_v63  ;;  %2724 = vmatprep.subr.bf16.mxu1 %v2723_v51 }
 0x8fa   :  { %2702 = vmatpush3.bf16.msra.mxu0 %v2699_v4 }
 0x8fb   :  { %2704 = vmatprep.subr.bf16.mxu0 %v2703_v6 }
 0x8fe   :  { %2706 = vmatpush3.bf16.msra.mxu0 %v2703_v6 }
 0x8ff   :  { %2716 = vmatprep.subr.bf16.mxu0 %v2715_v36 }
 0x9cc   :  { %v2508_v7 = vpop.f32.mrb[6].mxu0 }
 0x9cd   :  { %1035 = vrot.lane.b32.xlu1 %v2508_v7, %s3030_s28  ;;  %v1006_v8 = vpop.f32.mrb[7].mxu0 }
 0x9ce   :  { %1033 = vrot.lane.b32.xlu0 %v1006_v8, %s3030_s28  ;;  %v2270_v8 = vld [vmem:[%s3670_s12 + $0x30] sm:$0xff] }
 0xa3f   :  { %v1036_v14 = vpop.permute.xlu1 %1035 }
 0xa40   :  { %v1034_v17 = vpop.permute.xlu0 %1033  ;;  %v1045_v43 = vsel %vm1043_vm6, %v1042_v18, %v1036_v14  ;;  %v2743_v14 = vpack.c.bf16 %v2271_v9, %v2270_v8  ;;  %v1439_v18 = vld [vmem:[%s3672_s14 + $0x20] sm:$0xff]  ;;  %v2299_v9 = vld [vmem:[%s3672_s14 + $0x98] sm:$0xff] }
 0xa41   :  { %v1044_v42 = vsel %vm1043_vm6, %v1041_v16, %v1034_v17  ;;  %v2276_v16 = vld [vmem:[%s3672_s14 + $0x40] sm:$0xff]  ;;  %v2277_v17 = vld [vmem:[%s3672_s14 + $0x48] sm:$0xff] }
 0xa42   :  { %2517 = vmatprep.mubr.msk.f32.mxu0 %vm63_vm0, %v1044_v42  ;;  %v1440_v42 = vld [vmem:[%s3672_s14 + $0x28] sm:$0xff] }
 0xa43   :  { %2518 = vmatmul.mubr.msk.f32.vlgmr.msra.gmra.mrb[8].mxu0 %vm63_vm0, %v1045_v43  ;;  %v2747_v43 = vpack.c.bf16 %v2277_v17, %v2276_v16  ;;  %v2318_v17 = vld [vmem:[%s3672_s14 + $0xd0] sm:$0xff] }
 0xa44   :  { %2718 = vmatpush3.bf16.msra.mxu0 %v2715_v36  ;;  %v2257_v36 = vld [vmem:[%s3669_s11] ss:$0 sm:$0xff] }
 0xa45   :  { %2720 = vmatprep.subr.bf16.mxu0 %v2719_v39 }
 0xa48   :  { %2722 = vmatpush3.bf16.msra.mxu0 %v2719_v39 }
 0xa49   :  { %2740 = vmatprep.subr.bf16.mxu0 %v2739_v48 }
 0xb16   :  { %v2519_v19 = vpop.f32.mrb[8].mxu0 }
 0xb17   :  { %v1135_v20 = vadd.f32 %v2519_v19, %v2252_v60  ;;  %v1129_v21 = vpop.f32.mrb[9].mxu0  ;;  %v2278_v19 = vld [vmem:[%s3672_s14 + $0x50] sm:$0xff] }
 0xb18   :  { %v1130_v22 = vadd.f32 %v2252_v60, %v1129_v21  ;;  %v2731_v60 = vpack.c.bf16 %v1440_v42, %v1439_v18  ;;  %v2319_v18 = vld [vmem:[%s3672_s14 + $0xd8] sm:$0xff] }
 0xb19   :  { %v3321_v59 = vadd.f32 %v1135_v20, %v3148_v1  ;;  %v2279_v20 = vld [vmem:[%s3672_s14 + $0x58] sm:$0xff]  ;;  %v2799_v42 = vpack.c.bf16 %v2319_v18, %v2318_v17 }
 0xb1a   :  { %v3324_v23 = vadd.f32 %v1130_v22, %v3143_v0  ;;  %v2751_v21 = vpack.c.bf16 %v2279_v20, %v2278_v19  ;;  %v1441_v22 = vld [vmem:[%s3672_s14 + $0x30] sm:$0xff]  ;;  %v2320_v20 = vld [vmem:[%s3672_s14 + $0xe0] sm:$0xff] }
 0xb1b   :  { %v1145_v24 = vsel %vm63_vm0, %v3321_v59, 0.0 }
 0xb1c   :  { %1146 = vadd.xlane.f32.xlu1 %v1145_v24  ;;  %v1142_v25 = vsel %vm63_vm0, %v3324_v23, 0.0  ;;  %v1442_v24 = vld [vmem:[%s3672_s14 + $0x38] sm:$0xff] }
 0xb1d   :  { %1143 = vadd.xlane.f32.xlu0 %v1142_v25  ;;  %v2735_v25 = vpack.c.bf16 %v1442_v24, %v1441_v22  ;;  %v2322_v24 = vld [vmem:[%s3672_s14 + $0xf0] sm:$0xff] }
 0xba9   :  { %v1147_v26 = vpop.xlane.xlu1 %1146 }
 0xbaa   :  { %v1149_v27 = vmul.f32 0.03125, %v1147_v26  ;;  %v1144_v28 = vpop.xlane.xlu0 %1143  ;;  %v2280_v26 = vld [vmem:[%s3672_s14 + $0x60] sm:$0xff] }
 0xbab   :  { %v1148_v29 = vmul.f32 0.03125, %v1144_v28 }
 0xbac   :  { %v1151_v30 = vsub.f32 %v3321_v59, %v1149_v27  ;;  %v2281_v27 = vld [vmem:[%s3672_s14 + $0x68] sm:$0xff] }
 0xbad   :  { %v1150_v1 = vsub.f32 %v3324_v23, %v1148_v29  ;;  %v2755_v28 = vpack.c.bf16 %v2281_v27, %v2280_v26  ;;  %v2288_v29 = vld [vmem:[%s3670_s12 + $0x40] sm:$0xff] }
 0xbae   :  { %v1153_v32 = vmul.f32 %v1151_v30, %v1151_v30 }
 0xbaf   :  { %v1152_v31 = vmul.f32 %v1150_v1, %v1150_v1 }
 0xbb0   :  { %v1157_v33 = vsel %vm63_vm0, %v1153_v32, 0.0 }
 0xbb1   :  { %v1154_v0 = vsel %vm63_vm0, %v1152_v31, 0.0  ;;  %v2282_v31 = vld [vmem:[%s3672_s14 + $0x70] sm:$0xff] }
 0xbb2   :  { %1155 = vadd.xlane.f32.xlu0 %v1154_v0  ;;  %v2283_v0 = vld [vmem:[%s3672_s14 + $0x78] sm:$0xff] }
 0xbb3   :  { %v2759_v32 = vpack.c.bf16 %v2283_v0, %v2282_v31 }
 0xbb6   :  { %1158 = vadd.xlane.f32.xlu0 %v1157_v33  ;;  %v2308_v33 = vld [vmem:[%s3670_s12 + $0x60] sm:$0xff] }
 0xbb7   :  { %v2787_v35 = vpack.c.bf16 %v2309_v34, %v2308_v33 }
 0xc3f   :  { %v1156_v52 = vpop.xlane.xlu0 %1155 }
 0xc40   :  { %v1160_v53 = vmul.f32 0.03125, %v1156_v52  ;;  %v2767_v52 = vpack.c.bf16 %v2291_v47, %v2290_v46  ;;  %v2313_v46 = vld [vmem:[%s3671_s13 + $0x3] ss:$0 sm:$0xff] }
 0xc42   :  { %v1162_v54 = vadd.f32 1e-05, %v1160_v53  ;;  %v2273_v53 = vld [vmem:[%s3671_s13 + $0x1] ss:$0 sm:$0xff] }
 0xc43   :  { %v1159_v57 = vpop.xlane.xlu0 %1158 }
 0xc44   :  { %2935 = vrsqrt.f32 %v1162_v54  ;;  %v1161_v58 = vmul.f32 0.03125, %v1159_v57 }
 0xc46   :  { %v1163_v61 = vadd.f32 1e-05, %v1161_v58 }
 0xc48   :  { %2937 = vrsqrt.f32 %v1163_v61 }
 0xc4e   :  { %v2936_v63 = vpop.eup %2935 }
 0xc4f   :  { %v1166_v62 = vmul.f32 %v2936_v63, %v1150_v1  ;;  %v2310_v63 = vld [vmem:[%s3670_s12 + $0x70] sm:$0xff] }
 0xc51   :  { %v1174_v4 = vmul.f32 %v2255_v2, %v1166_v62 }
 0xc52   :  { %v2938_v5 = vpop.eup %2937 }
 0xc53   :  { %v1167_v6 = vmul.f32 %v2938_v5, %v1151_v30  ;;  %v3376_v7 = vadd.f32 %v2256_v3, %v1174_v4  ;;  %v2289_v30 = vld [vmem:[%s3670_s12 + $0x48] sm:$0xff]  ;;  %v2296_v5 = vld [vmem:[%s3672_s14 + $0x80] sm:$0xff] }
 0xc54   :  { %v2763_v1 = vpack.c.bf16 %v2289_v30, %v2288_v29 }
 0xc55   :  { %2528 = vmatprep.mubr.msk.f32.mxu1 %vm63_vm0, %v3376_v7  ;;  %2539 = vmatprep.mubr.msk.f32.mxu0 %vm63_vm0, %v3376_v7  ;;  %v1175_v10 = vmul.f32 %v2255_v2, %v1167_v6  ;;  %v2311_v2 = vld [vmem:[%s3670_s12 + $0x78] sm:$0xff]  ;;  %v2297_v6 = vld [vmem:[%s3672_s14 + $0x88] sm:$0xff] }
 0xc56   :  { %v2791_v4 = vpack.c.bf16 %v2311_v2, %v2310_v63  ;;  %v2771_v8 = vpack.c.bf16 %v2297_v6, %v2296_v5 }
 0xc57   :  { %v3394_v13 = vadd.f32 %v2256_v3, %v1175_v10 }
 0xc59   :  { %2529 = vmatmul.mubr.msk.f32.vlgmr.msra.gmra.mrb[10].mxu1 %vm63_vm0, %v3394_v13  ;;  %2540 = vmatmul.mubr.msk.f32.vlgmr.msra.gmra.mrb[10].mxu0 %vm63_vm0, %v3394_v13 }
 0xc5a   :  { %2742 = vmatpush3.bf16.msra.mxu0 %v2739_v48  ;;  %2569 = vmatprep.mubr.msk.f32.mxu0 %vm63_vm0, %v3376_v7 }
 0xc5b   :  { %2744 = vmatprep.subr.bf16.mxu0 %v2743_v14  ;;  %2726 = vmatpush3.bf16.msra.mxu1 %v2723_v51 }
 0xc5c   :  { %2728 = vmatprep.subr.bf16.mxu1 %v2727_v15 }
 0xc5e   :  { %2746 = vmatpush3.bf16.msra.mxu0 %v2743_v14  ;;  %v2795_v14 = vpack.c.bf16 %v2317_v12, %v2316_v11 }
 0xc5f   :  { %2730 = vmatpush3.bf16.msra.mxu1 %v2727_v15  ;;  %2748 = vmatprep.subr.bf16.mxu0 %v2747_v43  ;;  %v2301_v15 = vld [vmem:[%s3672_s14 + $0xa8] sm:$0xff] }
 0xc60   :  { %2732 = vmatprep.subr.bf16.mxu1 %v2731_v60 }
 0xc61   :  { %2570 = vmatmul.mubr.msk.f32.vlgmr.msra.gmra.mrb[12].mxu0 %vm63_vm0, %v3394_v13 }
 0xc62   :  { %2750 = vmatpush3.bf16.msra.mxu0 %v2747_v43  ;;  %v2302_v43 = vld [vmem:[%s3672_s14 + $0xb0] sm:$0xff] }
 0xc63   :  { %2734 = vmatpush3.bf16.msra.mxu1 %v2731_v60  ;;  %2752 = vmatprep.subr.bf16.mxu0 %v2751_v21  ;;  %v2303_v60 = vld [vmem:[%s3672_s14 + $0xb8] sm:$0xff] }
 0xc64   :  { %2736 = vmatprep.subr.bf16.mxu1 %v2735_v25  ;;  %v2783_v19 = vpack.c.bf16 %v2303_v60, %v2302_v43 }
 0xc66   :  { %2754 = vmatpush3.bf16.msra.mxu0 %v2751_v21  ;;  %v2321_v21 = vld [vmem:[%s3672_s14 + $0xe8] sm:$0xff] }
 0xc67   :  { %2738 = vmatpush3.bf16.msra.mxu1 %v2735_v25  ;;  %2756 = vmatprep.subr.bf16.mxu0 %v2755_v28  ;;  %v2803_v22 = vpack.c.bf16 %v2321_v21, %v2320_v20  ;;  %v2323_v25 = vld [vmem:[%s3672_s14 + $0xf8] sm:$0xff] }
 0xc68   :  { %2764 = vmatprep.subr.bf16.mxu1 %v2763_v1  ;;  %v2807_v26 = vpack.c.bf16 %v2323_v25, %v2322_v24 }
 0xc6a   :  { %2758 = vmatpush3.bf16.msra.mxu0 %v2755_v28 }
 0xc6b   :  { %2760 = vmatprep.subr.bf16.mxu0 %v2759_v32 }
 0xc6e   :  { %2762 = vmatpush3.bf16.msra.mxu0 %v2759_v32 }
 0xc6f   :  { %2788 = vmatprep.subr.bf16.mxu0 %v2787_v35 }
 0xd2c   :  { %v2530_v50 = vpop.f32.mrb[10].mxu1  ;;  %v2541_v55 = vpop.f32.mrb[10].mxu0 }
 0xd2d   :  { %v3458_v38 = vadd.f32 %v2530_v50, %v2257_v36  ;;  %v1430_v56 = vadd.f32 %v2541_v55, %v2262_v37  ;;  %v1267_v39 = vpop.f32.mrb[11].mxu1  ;;  %v1424_v40 = vpop.f32.mrb[11].mxu0 }
 0xd2e   :  { %v3460_v44 = vadd.f32 %v2257_v36, %v1267_v39  ;;  %v1425_v45 = vadd.f32 %v2262_v37, %v1424_v40  ;;  %v2293_v37 = vld [vmem:[%s3671_s13 + $0x2] ss:$0 sm:$0xff] }
 0xd2f   :  { %v1280_v48 = vsel %vm1276_vm7, %v3458_v38, -inf  ;;  %v1434_v51 = vmax.f32 %v1430_v56, 0.0 }
 0xd30   :  { %v1433_v41 = vmax.f32 %v1425_v45, 0.0  ;;  %1281 = vmax.xlane.f32.xlu1 %v1280_v48  ;;  %v1277_v49 = vsel %vm1276_vm7, %v3460_v44, -inf }
 0xd31   :  { %1278 = vmax.xlane.f32.xlu0 %v1277_v49 }
 0xd32   :  { %2558 = vmatprep.mubr.msk.f32.mxu1 %vm1450_vm8, %v1433_v41 }
 0xd33   :  { %2559 = vmatmul.mubr.msk.f32.vlgmr.msra.gmra.mrb[12].mxu1 %vm1450_vm8, %v1434_v51 }
 0xd34   :  { %v2571_v54 = vpop.f32.mrb[12].mxu0  ;;  %2766 = vmatpush3.bf16.msra.mxu1 %v2763_v1  ;;  %2599 = vmatprep.mubr.msk.f32.mxu1 %vm63_vm0, %v3376_v7 }
 0xd35   :  { %v1631_v57 = vadd.f32 %v2571_v54, %v2273_v53  ;;  %v1625_v58 = vpop.f32.mrb[13].mxu0  ;;  %2768 = vmatprep.subr.bf16.mxu1 %v2767_v52 }
 0xd36   :  { %v1626_v61 = vadd.f32 %v2273_v53, %v1625_v58 }
 0xd37   :  { %v1635_v3 = vmax.f32 %v1631_v57, 0.0 }
 0xd38   :  { %v1634_v62 = vmax.f32 %v1626_v61, 0.0  ;;  %2770 = vmatpush3.bf16.msra.mxu1 %v2767_v52 }
 0xd39   :  { %2772 = vmatprep.subr.bf16.mxu1 %v2771_v8 }
 0xd3a   :  { %2588 = vmatprep.mubr.msk.f32.mxu0 %vm1450_vm8, %v1634_v62 }
 0xd3b   :  { %2589 = vmatmul.mubr.msk.f32.vlgmr.msra.gmra.mrb[14].mxu0 %vm1450_vm8, %v1635_v3  ;;  %2600 = vmatmul.mubr.msk.f32.vlgmr.msra.gmra.mrb[14].mxu1 %vm63_vm0, %v3394_v13 }
 0xd3c   :  { %2790 = vmatpush3.bf16.msra.mxu0 %v2787_v35  ;;  %2629 = vmatprep.mubr.msk.f32.mxu0 %vm63_vm0, %v3376_v7  ;;  %v2298_v7 = vld [vmem:[%s3672_s14 + $0x90] sm:$0xff] }
 0xd3d   :  { %2792 = vmatprep.subr.bf16.mxu0 %v2791_v4  ;;  %2774 = vmatpush3.bf16.msra.mxu1 %v2771_v8  ;;  %v2775_v10 = vpack.c.bf16 %v2299_v9, %v2298_v7 }
 0xd3f   :  { %2776 = vmatprep.subr.bf16.mxu1 %v2775_v10 }
 0xd40   :  { %2794 = vmatpush3.bf16.msra.mxu0 %v2791_v4 }
 0xd41   :  { %2778 = vmatpush3.bf16.msra.mxu1 %v2775_v10  ;;  %2796 = vmatprep.subr.bf16.mxu0 %v2795_v14 }
 0xd43   :  { %2630 = vmatmul.mubr.msk.f32.vlgmr.msra.gmra.mrb[16].mxu0 %vm63_vm0, %v3394_v13  ;;  %v2300_v13 = vld [vmem:[%s3672_s14 + $0xa0] sm:$0xff] }
 0xd44   :  { %v2779_v16 = vpack.c.bf16 %v2301_v15, %v2300_v13  ;;  %2798 = vmatpush3.bf16.msra.mxu0 %v2795_v14 }
 0xd45   :  { %2800 = vmatprep.subr.bf16.mxu0 %v2799_v42 }
 0xd46   :  { %2780 = vmatprep.subr.bf16.mxu1 %v2779_v16 }
 0xd47   :  { %2782 = vmatpush3.bf16.msra.mxu1 %v2779_v16  ;;  %v1305_v16 = vlaneseq }
 0xd48   :  { %2784 = vmatprep.subr.bf16.mxu1 %v2783_v19  ;;  %2802 = vmatpush3.bf16.msra.mxu0 %v2799_v42 }
 0xd49   :  { %2804 = vmatprep.subr.bf16.mxu0 %v2803_v22  ;;  %v1306_v17 = vand.u32 127, %v1305_v16 }
 0xd4b   :  { %2786 = vmatpush3.bf16.msra.mxu1 %v2783_v19 }
 0xd4c   :  { %2806 = vmatpush3.bf16.msra.mxu0 %v2803_v22 }
 0xd4d   :  { %2808 = vmatprep.subr.bf16.mxu0 %v2807_v26 }
 0xd50   :  { %2810 = vmatpush3.bf16.msra.mxu0 %v2807_v26 }
 0xdbd   :  { %v1282_v27 = vpop.xlane.xlu1 %1281 }
 0xdbe   :  { %v1284_v28 = vsub.f32 %v3458_v38, %v1282_v27  ;;  %v1279_v29 = vpop.xlane.xlu0 %1278 }
 0xdbf   :  { %v1283_v30 = vsub.f32 %v3460_v44, %v1279_v29 }
 0xdc0   :  { %v1287_v1 = vmul.f32 1.442695, %v1284_v28 }
 0xdc1   :  { %v1285_v31 = vmul.f32 1.442695, %v1283_v30 }
 0xdc2   :  { %2939 = vpow2.f32 %v1287_v1 }
 0xdc3   :  { %2941 = vpow2.f32 %v1285_v31 }
 0xdcc   :  { %v2940_v0 = vpop.eup %2939 }
 0xdcd   :  { %v2942_v32 = vpop.eup %2941  ;;  %v1292_v33 = vsel %vm1276_vm7, %v2940_v0, 0.0 }
 0xdce   :  { %1293 = vadd.xlane.f32.xlu1 %v1292_v33  ;;  %v1289_v34 = vsel %vm1276_vm7, %v2942_v32, 0.0  ;;  %v3032_v33 = vmov 0  }
 0xdcf   :  { %1290 = vadd.xlane.f32.xlu0 %v1289_v34 }
 0xdd0   :  { %2874 = vset.pattern.permute.xlu0 %v3032_v33 }
 0xe06   :  { %v3545_v35 = vpop.f32.mrb[12].mxu1 }
 0xe07   :  { %v3547_v36 = vpop.f32.mrb[13].mxu1 }
 0xe0e   :  { %v3552_v50 = vpop.f32.mrb[14].mxu0  ;;  %v2601_v55 = vpop.f32.mrb[14].mxu1 }
 0xe0f   :  { %v1831_v38 = vadd.f32 %v2601_v55, %v2293_v37  ;;  %v3554_v56 = vpop.f32.mrb[15].mxu0  ;;  %v1825_v39 = vpop.f32.mrb[15].mxu1 }
 0xe10   :  { %v1826_v40 = vadd.f32 %v2293_v37, %v1825_v39 }
 0xe11   :  { %v1835_v45 = vmax.f32 %v1831_v38, 0.0 }
 0xe12   :  { %v1834_v44 = vmax.f32 %v1826_v40, 0.0 }
 0xe14   :  { %2618 = vmatprep.mubr.msk.f32.mxu1 %vm1450_vm8, %v1834_v44 }
 0xe15   :  { %2619 = vmatmul.mubr.msk.f32.vlgmr.msra.gmra.mrb[16].mxu1 %vm1450_vm8, %v1835_v45 }
 0xe16   :  { %v2631_v47 = vpop.f32.mrb[16].mxu0 }
 0xe17   :  { %v2031_v48 = vadd.f32 %v2631_v47, %v2313_v46  ;;  %v2025_v41 = vpop.f32.mrb[17].mxu0 }
 0xe18   :  { %v2026_v49 = vadd.f32 %v2313_v46, %v2025_v41 }
 0xe19   :  { %v2035_v52 = vmax.f32 %v2031_v48, 0.0  ;;  %v3033_v48 = vmov 0.0  }
 0xe1a   :  { %v2034_v51 = vmax.f32 %v2026_v49, 0.0 }
 0xe1c   :  { %2648 = vmatprep.mubr.msk.f32.mxu0 %vm1450_vm8, %v2034_v51 }
 0xe1d   :  { %2649 = vmatmul.mubr.msk.f32.vlgmr.msra.gmra.mrb[18].mxu0 %vm1450_vm8, %v2035_v52 }
 0xe5b   :  { %v1294_v53 = vpop.xlane.xlu1 %1293 }
 0xe5c   :  { %2943 = vrcp.f32 %v1294_v53  ;;  %v1291_v54 = vpop.xlane.xlu0 %1290 }
 0xe5d   :  { %2945 = vrcp.f32 %v1291_v54 }
 0xe66   :  { %v2944_v57 = vpop.eup %2943 }
 0xe67   :  { %v2946_v58 = vpop.eup %2945  ;;  %v1298_v61 = vmul.f32 %v2944_v57, %v2940_v0 }
 0xe68   :  { %v1297_v63 = vmul.f32 %v2946_v58, %v2942_v32  ;;  %v3031_v32 = vmov 1   ;;  %v3034_v58 = vmov 2  }
 0xe69   :  { %v1302_v2 = vsel %vm1276_vm7, %v1298_v61, -inf  ;;  %v2164_v62 = vsel %vm1276_vm7, %v1298_v61, 0.0  ;;  %2880 = vset.pattern.permute.xlu1 %v3031_v32 }
 0xe6a   :  { %1303 = vmax.xlane.f32.xlu1 %v1302_v2  ;;  %v1299_v3 = vsel %vm1276_vm7, %v1297_v63, -inf  ;;  %v2163_v4 = vsel %vm1276_vm7, %v1297_v63, 0.0 }
 0xe6b   :  { %1300 = vmax.xlane.f32.xlu0 %v1299_v3  ;;  %v2165_v5 = vadd.f32 %v2164_v62, %v2163_v4 }
 0xe6d   :  { %v2166_v6 = vrot.slane %v2165_v5, 4 }
 0xe6f   :  { %v2167_v8 = vadd.f32 %v2166_v6, %v2165_v5 }
 0xe71   :  { %v2168_v7 = vrot.slane %v2167_v8, 2 }
 0xe73   :  { %v2169_v9 = vadd.f32 %v2168_v7, %v2167_v8 }
 0xe75   :  { %v2170_v10 = vrot.slane %v2169_v9, 1 }
 0xe77   :  { %v2171_v11 = vadd.f32 %v2170_v10, %v2169_v9 }
 0xe79   :  { %2172 = vst.msk [vmem:[#allocation6] sm:$0x1] %vm2161_vm9, %v2171_v11 }
 0xee8   :  { %v3568_v12 = vpop.f32.mrb[16].mxu1 }
 0xee9   :  { %v3570_v13 = vpop.f32.mrb[17].mxu1 }
 0xef0   :  { %v3572_v14 = vpop.f32.mrb[18].mxu0 }
 0xef1   :  { %v3574_v15 = vpop.f32.mrb[19].mxu0 }
 0xef7   :  { %v3576_v18 = vpop.xlane.xlu1 %1303 }
 0xef8   :  { %vm1308_vm11 = vcmp.ge.f32.partialorder %v1298_v61, %v3576_v18  ;;  %2175 = vst.msk [vmem:[%s3677_s19 + $0x8] sm:$0xff] %vm2173_vm10, %v3576_v18  ;;  %v3583_v42 = vpop.xlane.xlu0 %1300 }
 0xef9   :  { %vm1307_vm12 = vcmp.ge.f32.partialorder %v1297_v63, %v3583_v42  ;;  %2174 = vst.msk [vmem:[%s3677_s19] sm:$0xff] %vm2173_vm10, %v3583_v42  ;;  %v1310_v43 = vsel %vm1308_vm11, %v1306_v17, 4  ;;  %v3035_v63 = vmov 3   ;;  %s3036_s19 = smov [#allocation4]  }
 0xefa   :  { %v1326_v60 = vsel %vm1276_vm7, %v1310_v43, 2147483647  ;;  %v1309_v19 = vsel %vm1307_vm12, %v1306_v17, 4  ;;  %s2194_s11 = sshll.u32 %s3036_s19, 4  ;;  %s2195_s11 = int_to_ptr.vmem [resolvable:$true] %s2194_s11 }
 0xefb   :  { %v1328_v20 = vshra.s32 %v1326_v60, 16  ;;  %v1311_v21 = vsel %vm1276_vm7, %v1309_v19, 2147483647  ;;  %v1327_v26 = vand.u32 65535, %v1326_v60  ;;  %s2947_s4 = scalar_lea.vmem %s2195_s11, 16  ;;  %s2951_s5 = scalar_lea.vmem %s2195_s11, 32 }
 0xefc   :  { %v1313_v22 = vshra.s32 %v1311_v21, 16  ;;  %v1312_v27 = vand.u32 65535, %v1311_v21  ;;  %p2948_p0 = scmp.ne.s32.totalorder %s2195_s11, %s2947_s4  ;;  %p2952_p1 = scmp.lt.s32.totalorder %s2195_s11, %s2195_s11 }
 0xefd   :  { %v1330_v24 = vcvt.s32.f32 %v1328_v20  ;;  %v1329_v29 = vcvt.s32.f32 %v1327_v26  ;;  %p2953_p2 = scmp.lt.s32.totalorder %s2951_s5, %s2947_s4 }
 0xefe   :  { %v1315_v25 = vcvt.s32.f32 %v1313_v22  ;;  %v1314_v1 = vcvt.s32.f32 %v1312_v27 }
 0xeff   :  { %1331 = vmin.xlane.f32.xlu1 %v1330_v24  ;;  %p2954_p3 = por %p2953_p2, %p2952_p1 }
 0xf00   :  { %1316 = vmin.xlane.f32.xlu0 %v1315_v25 }
 0xf01   :  { %p2955_p4 = pnand %p2954_p3, %p2948_p0 }
 0xf8c   :  { %v1332_v28 = vpop.xlane.xlu1 %1331 }
 0xf8d   :  { %v1317_v30 = vpop.xlane.xlu0 %1316  ;;  %vm1333_vm13 = vcmp.eq.f32.partialorder %v1330_v24, %v1332_v28  ;;  %v1338_v34 = vcvt.f32.s32 %v1332_v28 }
 0xf8e   :  { %v1334_v31 = vsel %vm1333_vm13, %v1329_v29, inf  ;;  %vm1318_vm14 = vcmp.eq.f32.partialorder %v1315_v25, %v1317_v30  ;;  %v1323_v37 = vcvt.f32.s32 %v1317_v30 }
 0xf8f   :  { %1335 = vmin.xlane.f32.xlu1 %v1334_v31  ;;  %v1319_v0 = vsel %vm1318_vm14, %v1314_v1, inf  ;;  %v1339_v38 = vshll.u32 %v1338_v34, 16 }
 0xf90   :  { %1320 = vmin.xlane.f32.xlu0 %v1319_v0  ;;  %v1324_v44 = vshll.u32 %v1323_v37, 16 }
0x101c   :  { %v1336_v55 = vpop.xlane.xlu1 %1335 }
0x101d   :  { %v1337_v39 = vcvt.f32.s32 %v1336_v55  ;;  %v1321_v40 = vpop.xlane.xlu0 %1320 }
0x101e   :  { %v1322_v45 = vcvt.f32.s32 %v1321_v40 }
0x101f   :  { %v1340_v46 = vadd.s32 %v1339_v38, %v1337_v39 }
0x1020   :  { %v1325_v47 = vadd.s32 %v1324_v44, %v1322_v45 }
0x1021   :  { %vm1342_vm15 = vcmp.eq.s32.totalorder %v1306_v17, %v1340_v46 }
0x1022   :  { %v2261_v41 = vsel %vm1342_vm15, 1.0, %v3033_v48  ;;  %vm1341_vm1 = vcmp.eq.s32.totalorder %v1306_v17, %v1325_v47 }
0x1023   :  { %v2260_v49 = vsel %vm1341_vm1, 1.0, %v3033_v48  ;;  %v2153_v51 = vsel %vm1276_vm7, %v2261_v41, 0.0 }
0x1024   :  { %v2881_v52 = vpack.i.bf16 %v2261_v41, %v2260_v49  ;;  %v2152_v53 = vsel %vm1276_vm7, %v2260_v49, 0.0 }
0x1025   :  { %v2154_v54 = vadd.f32 %v2153_v51, %v2152_v53 }
0x1026   :  { %2882 = vperm.xlu1 %2880, %v2881_v52   ;;  %2876 = vperm.xlu0 %2874, %v2881_v52  }
0x1027   :  { %v2155_v57 = vrot.slane %v2154_v54, 4 }
0x1029   :  { %v2156_v61 = vadd.f32 %v2155_v57, %v2154_v54 }
0x102a   :  { %2886 = vset.pattern.permute.xlu1 %v3034_v58  ;;  %2898 = vset.pattern.permute.xlu0 %v3035_v63 }
0x102b   :  { %2888 = vperm.xlu1 %2886, %v2881_v52   ;;  %v2157_v2 = vrot.slane %v2156_v61, 2 }
0x102d   :  { %v2158_v62 = vadd.f32 %v2157_v2, %v2156_v61 }
0x102f   :  { %2892 = vset.pattern.permute.xlu1 %v3035_v63  ;;  %v2159_v3 = vrot.slane %v2158_v62, 1 }
0x1030   :  { %2894 = vperm.xlu1 %2892, %v2881_v52  }
0x1031   :  { %v2160_v4 = vadd.f32 %v2159_v3, %v2158_v62 }
0x1033   :  { %2162 = vst.msk [vmem:[#allocation4] sm:$0x1] %vm2161_vm9, %v2160_v4 }
0x1034   :  { %2958 = shalt.err (!%p2955_p4)
}
0x1035   :  { %s2959_s28 = scalar_lea.hbm %s3675_s17, 16 }
0x1036   :  { %p2960_p5 = scmp.ne.s32.totalorder %s3675_s17, %s2959_s28  ;;  %p2963_p6 = scmp.lt.u32.totalorder %s2959_s28, %s3675_s17 }
0x1038   :  { %p2965_p7 = pnand %p2963_p6, %p2960_p5 }
0x103a   :  { %2968 = shalt.err (!%p2965_p7)
}
0x103b   :  { %2197 = dma.vmem_to_hbm [thread:$0]  %s2195_s11, 16, %s3675_s17, [#allocation5]  }
0x103c   :  { %s3037_s30 = smov [#allocation6]  }
0x103d   :  { %s2204_s10 = sshll.u32 %s3037_s30, 4  ;;  %s2205_s10 = int_to_ptr.vmem [resolvable:$true] %s2204_s10 }
0x103e   :  { %s2969_s20 = scalar_lea.vmem %s2205_s10, 16  ;;  %s2973_s21 = scalar_lea.vmem %s2205_s10, 32 }
0x103f   :  { %p2970_p8 = scmp.ne.s32.totalorder %s2205_s10, %s2969_s20  ;;  %p2974_p9 = scmp.lt.s32.totalorder %s2205_s10, %s2205_s10 }
0x1040   :  { %p2975_p10 = scmp.lt.s32.totalorder %s2973_s21, %s2969_s20 }
0x1042   :  { %p2976_p11 = por %p2975_p10, %p2974_p9 }
0x1044   :  { %p2977_p12 = pnand %p2976_p11, %p2970_p8 }
0x1046   :  { %2980 = shalt.err (!%p2977_p12)
}
0x1047   :  { %s2981_s2 = scalar_lea.hbm %s3676_s18, 16 }
0x1048   :  { %p2982_p13 = scmp.ne.s32.totalorder %s3676_s18, %s2981_s2  ;;  %p2985_p0 = scmp.lt.u32.totalorder %s2981_s2, %s3676_s18 }
0x104a   :  { %p2987_p1 = pnand %p2985_p0, %p2982_p13 }
0x104c   :  { %2990 = shalt.err (!%p2987_p1)
}
0x104d   :  { %2207 = dma.vmem_to_hbm [thread:$0]  %s2205_s10, 16, %s3676_s18, [#allocation5]   ;;  %v2265_v5 = vld [vmem:[%s3673_s15] ss:$0 sm:$0xff]  ;;  %v2285_v6 = vld [vmem:[%s3673_s15 + $0x1] ss:$0 sm:$0xff] }
0x104e   :  { %v1529_v8 = vadd.f32 %v3545_v35, %v2265_v5  ;;  %v1524_v7 = vadd.f32 %v2265_v5, %v3547_v36  ;;  %v1731_v9 = vadd.f32 %v3552_v50, %v2285_v6  ;;  %v1726_v10 = vadd.f32 %v2285_v6, %v3554_v56  ;;  %v2305_v20 = vld [vmem:[%s3673_s15 + $0x2] ss:$0 sm:$0xff]  ;;  %v2325_v29 = vld [vmem:[%s3673_s15 + $0x3] ss:$0 sm:$0xff]  ;;  %s3038_s28 = smov [#allocation2]  }
0x104f   :  { %v1931_v50 = vadd.f32 %v3568_v12, %v2305_v20  ;;  %v1926_v56 = vadd.f32 %v2305_v20, %v3570_v13  ;;  %v2131_v33 = vadd.f32 %v3572_v14, %v2325_v29  ;;  %v2126_v34 = vadd.f32 %v2325_v29, %v3574_v15  ;;  %s2181_s8 = sshll.u32 %s3038_s28, 4  ;;  %s2182_s8 = int_to_ptr.vmem [resolvable:$true] %s2181_s8 }
0x1050   :  { %s2991_s15 = scalar_lea.vmem %s2182_s8, 256  ;;  %p2996_p3 = scmp.lt.s32.totalorder %s2182_s8, %s2182_s8 }
0x1051   :  { %p2992_p2 = scmp.ne.s32.totalorder %s2182_s8, %s2991_s15  ;;  %p2997_p4 = scmp.lt.s32.totalorder %s2991_s15, %s2991_s15 }
0x1053   :  { %p2998_p5 = por %p2997_p4, %p2996_p3 }
0x1055   :  { %p2999_p6 = pnand %p2998_p5, %p2992_p2 }
0x10a5   :  { %v2883_v11 = vpop.permute.xlu1 %2882  ;;  %v2877_v16 = vpop.permute.xlu0 %2876 }
0x10a6   :  { %v2885_v17 = vunpack.i.h.bf16 %v2883_v11  ;;  %v2884_v43 = vunpack.i.l.bf16 %v2883_v11  ;;  %v2879_v60 = vunpack.i.h.bf16 %v2877_v16  ;;  %v2878_v19 = vunpack.i.l.bf16 %v2877_v16 }
0x10a8   :  { %v1743_v21 = vmul.f32 %v2885_v17, %v1731_v9  ;;  %v1742_v22 = vmul.f32 %v2884_v43, %v1726_v10  ;;  %v1543_v24 = vmul.f32 %v2879_v60, %v1529_v8  ;;  %v1542_v35 = vmul.f32 %v2878_v19, %v1524_v7 }
0x10aa   :  { %v1745_v25 = vadd.f32 %v1743_v21, %v1543_v24  ;;  %v1744_v36 = vadd.f32 %v1742_v22, %v1542_v35  ;;  %v2889_v26 = vpop.permute.xlu1 %2888 }
0x10ab   :  { %v2891_v27 = vunpack.i.h.bf16 %v2889_v26  ;;  %v2890_v28 = vunpack.i.l.bf16 %v2889_v26 }
0x10ad   :  { %v1943_v30 = vmul.f32 %v2891_v27, %v1931_v50  ;;  %v1942_v1 = vmul.f32 %v2890_v28, %v1926_v56 }
0x10af   :  { %v1944_v31 = vadd.f32 %v1942_v1, %v1744_v36  ;;  %v1945_v0 = vadd.f32 %v1943_v30, %v1745_v25  ;;  %v2895_v32 = vpop.permute.xlu1 %2894 }
0x10b0   :  { %v2897_v37 = vunpack.i.h.bf16 %v2895_v32  ;;  %v2896_v55 = vunpack.i.l.bf16 %v2895_v32 }
0x10b2   :  { %v2143_v12 = vmul.f32 %v2897_v37, %v2131_v33  ;;  %v2142_v38 = vmul.f32 %v2896_v55, %v2126_v34 }
0x10b4   :  { %v2144_v13 = vadd.f32 %v2142_v38, %v1944_v31  ;;  %v2145_v39 = vadd.f32 %v2143_v12, %v1945_v0 }
0x10b6   :  { %v2146_v40 = vmul.f32 %v2144_v13, %v3583_v42  ;;  %v2147_v44 = vmul.f32 %v2145_v39, %v3576_v18 }
0x10b8   :  { %v2148_v45 = vadd.f32 %v2146_v40, %v3324_v23  ;;  %v2149_v46 = vadd.f32 %v2147_v44, %v3321_v59 }
0x10ba   :  { %2150 = vst.msk [vmem:[#allocation2] sm:$0xff] %vm63_vm0, %v2148_v45  ;;  %2151 = vst.msk [vmem:[#allocation2 + $0x8] sm:$0xff] %vm63_vm0, %v2149_v46 }
0x10bb   :  { %3002 = shalt.err (!%p2999_p6)
}
0x10bc   :  { %s3003_s9 = scalar_lea.hbm %s3674_s16, 256 }
0x10bd   :  { %p3004_p7 = scmp.ne.s32.totalorder %s3674_s16, %s3003_s9  ;;  %p3007_p8 = scmp.lt.u32.totalorder %s3003_s9, %s3674_s16 }
0x10bf   :  { %p3009_p9 = pnand %p3007_p8, %p3004_p7 }
0x10c1   :  { %3012 = shalt.err (!%p3009_p9)
}
0x10c2   :  { %s3039_s20 = smov 128  }
0x10c3   :  { %2187 = dma.vmem_to_hbm [thread:$0]  %s2182_s8, 256, %s3674_s16, [#allocation3], %s3039_s20, %s3039_s20, %s3028_s1  }
0x10c4   :  { %3013 = dma.done.wait [#allocation3], 256  }
0x10c5   :  { %3014 = vsyncadd [#allocation3], 4294967040 }
0x10c6   :  { %3015 = dma.done.wait [#allocation5], 32  }
0x10c7   :  { %3016 = vsyncadd [#allocation5], 4294967264 }
0x10c8   :  { %2221 = vsyncpa [#allocation3], 1 }
0x10c9   :  { %2222 = vsyncpa [#allocation5], 1 }

</bundles_post_ra>
